<compile_context>
chip_gen: v7x
topology: tpu7x:2x2x1
jax: 0.10.0
libtpu: 0.0.40
codegen_flags: <defaults>
</compile_context>

<pallas_src>
import functools

import jax
import jax.numpy as jnp
from jax.experimental import pallas as pl
from jax.experimental.pallas import tpu as pltpu

_HALO = 128                       # one lane-tile of halo on each side (K//2 <= 128)
_VMEM_BUDGET = 28 * 1024 * 1024   # per-step working-set target (fits v7x's 64 MiB VMEM)
_VMEM_LIMIT = 48 * 1024 * 1024    # scoped-VMEM limit handed to Mosaic


def _round_up(x, m):
    return ((x + m - 1) // m) * m


def _vmem_estimate(TL, BB, C_in, C_out, K, in_bytes, out_bytes):
    """Rough per-grid-step VMEM working set (double-buffered blocks + intermediates)."""
    center = 2 * BB * C_in * TL * in_bytes            # input tile, double buffered
    halos = 2 * 2 * BB * C_in * _HALO * in_bytes      # left+right halo, double buffered
    outb = 2 * BB * C_out * TL * out_bytes            # output tile, double buffered
    w2 = 2 * C_out * K * C_in * 2                     # folded bf16 weight
    xw = BB * C_in * (TL + 2 * _HALO) * 2             # bf16 window
    im2col = BB * K * C_in * TL * 2                   # bf16 im2col stack (MXU RHS)
    acc = BB * C_out * TL * 4                         # f32 matmul result
    return center + halos + outb + w2 + xw + im2col + acc


def _dws_conv1d_kernel(xl_ref, xc_ref, xr_ref, w2_ref, bias_ref, o_ref, *,
                       K, pad, L, TL, BB, compute_dtype):
    """One (batch-block, length-tile) grid step.

    xl_ref:   [BB, C_in, 128]     left halo (128 columns just before this tile)
    xc_ref:   [BB, C_in, TL]      current length tile of the UNPADDED input
    xr_ref:   [BB, C_in, 128]     right halo (128 columns just after this tile)
    w2_ref:   [C_out, K*C_in]     folded weight  W2[o, k*C_in+c] = Wp[o,c]*Wd[c,k]  (bf16)
    bias_ref: [C_out, 1]          folded bias    Wp @ b_dw + b_pw                   (f32)
    o_ref:    [BB, C_out, TL]     output tile
    """
    t = pl.program_id(1)
    c_start = t * TL  # absolute input column of the first center lane

    # Lane masks implement the conv's zero padding and the ragged tail (columns >= L).
    lane_c = jax.lax.broadcasted_iota(jnp.int32, (1, TL), 1)
    lane_h = jax.lax.broadcasted_iota(jnp.int32, (1, _HALO), 1)
    left_ok = (c_start - _HALO + lane_h) >= 0          # false for the whole halo at t==0
    center_ok = (c_start + lane_c) < L                 # ragged / clamped tail -> zeros
    right_ok = (c_start + TL + lane_h) < L             # beyond end of sequence -> zeros

    w2 = w2_ref[...]                                   # [C_out, K*C_in] bf16

    cols = []
    for r in range(BB):                                # BB is small & static
        xl = jnp.where(left_ok, xl_ref[r].astype(compute_dtype), 0)
        xc = jnp.where(center_ok, xc_ref[r].astype(compute_dtype), 0)
        xr = jnp.where(right_ok, xr_ref[r].astype(compute_dtype), 0)
        xw = jnp.concatenate([xl, xc, xr], axis=-1)    # [C_in, TL + 256]
        # im2col: K statically shifted windows stacked along the contraction axis.
        x2 = jnp.concatenate(
            [xw[:, _HALO - pad + k:_HALO - pad + k + TL] for k in range(K)],
            axis=0)                                    # [K*C_in, TL]
        cols.append(x2)
    x2 = cols[0] if BB == 1 else jnp.concatenate(cols, axis=-1)   # [K*C_in, BB*TL]

    # Depthwise + pointwise conv as ONE MXU matmul, f32 accumulation, folded bias.
    out = jnp.dot(w2, x2, preferred_element_type=jnp.float32) + bias_ref[...]

    for r in range(BB):                                # lane-dense, 128-aligned stores
        o_ref[r] = out[:, r * TL:(r + 1) * TL].astype(o_ref.dtype)


def depthwise_separable_conv1d(x, depthwise_weight, depthwise_bias,
                               pointwise_weight, pointwise_bias, *,
                               l_tile=2048, compute_dtype=jnp.bfloat16,
                               out_dtype=jnp.float32,
                               vmem_budget_bytes=_VMEM_BUDGET,
                               vmem_limit_bytes=_VMEM_LIMIT):
    """Matches DepthWiseSeparableConv.forward (dim=1).

    x:                [B, C_in, L]      (f32 or bf16; passed to the kernel unpadded)
    depthwise_weight: [C_in, 1, K]      Conv1d weight, groups=C_in
    depthwise_bias:   [C_in]
    pointwise_weight: [C_out, C_in, 1]  Conv1d weight, kernel_size=1
    pointwise_bias:   [C_out]
    returns:          [B, C_out, L_out] (out_dtype), L_out = L + 2*(K//2) - K + 1
    """
    B, C_in, L = x.shape
    C_out = pointwise_weight.shape[0]
    K = depthwise_weight.shape[-1]
    assert depthwise_weight.shape == (C_in, 1, K)
    assert pointwise_weight.shape == (C_out, C_in, 1)
    pad = K // 2
    assert pad <= _HALO, "kernel_size too large for a single 128-lane halo"
    L_out = L + 2 * pad - K + 1

    in_bytes = jnp.dtype(x.dtype).itemsize
    out_bytes = jnp.dtype(out_dtype).itemsize

    # ---- Tile selection: lane-dense (multiple of 128), as big as the VMEM budget allows.
    tl_cap = _round_up(L_out, _HALO)
    TL = min(max(_HALO, (l_tile // _HALO) * _HALO), tl_cap)
    while TL > _HALO and _vmem_estimate(TL, 1, C_in, C_out, K, in_bytes, out_bytes) > vmem_budget_bytes:
        TL -= _HALO
    nT = pl.cdiv(L_out, TL)
    hs = TL // _HALO
    nbTL = pl.cdiv(L, TL)       # number of TL-sized input blocks (for index clamping)
    nb128 = pl.cdiv(L, _HALO)   # number of 128-lane input blocks

    # Short sequences: process several batch rows per grid step to amortize the
    # fixed per-step pipeline overhead (one fused matmul over all rows).
    BB = 1
    if nT == 1 and B > 1:
        for cand in range(min(B, 8), 1, -1):
            if B % cand == 0 and _vmem_estimate(TL, cand, C_in, C_out, K,
                                                in_bytes, out_bytes) <= vmem_budget_bytes:
                BB = cand
                break

    # ---- Fold weights & biases once in the wrapper (f32 math, bf16 matmul operand).
    wd = depthwise_weight[:, 0, :].astype(jnp.float32)        # [C_in, K]
    wp = pointwise_weight[:, :, 0].astype(jnp.float32)        # [C_out, C_in]
    #   Wp @ (dwconv(x)) with per-tap scales folded in:  W2[o, k*C_in + c] = Wp[o,c]*Wd[c,k]
    w2 = (wp[:, None, :] * wd.T[None, :, :]).reshape(C_out, K * C_in).astype(compute_dtype)
    #   Wp @ (dw + b_dw) + b_pw == Wp @ dw + (Wp @ b_dw + b_pw)
    bias = (wp @ depthwise_bias.astype(jnp.float32)
            + pointwise_bias.astype(jnp.float32)).reshape(C_out, 1)

    kernel = functools.partial(_dws_conv1d_kernel, K=K, pad=pad, L=L, TL=TL, BB=BB,
                               compute_dtype=compute_dtype)

    out = pl.pallas_call(
        kernel,
        out_shape=jax.ShapeDtypeStruct((B, C_out, L_out), out_dtype),
        grid=(B // BB, nT),
        in_specs=[
            # left halo: the 128 columns just before this tile (clamped at t==0; masked)
            pl.BlockSpec((BB, C_in, _HALO),
                         lambda b, t: (b, 0, jnp.maximum(t * hs - 1, 0))),
            # current length tile of the unpadded input (clamped for the even-K tail tile)
            pl.BlockSpec((BB, C_in, TL),
                         lambda b, t: (b, 0, jnp.minimum(t, nbTL - 1))),
            # right halo: the 128 columns just after this tile (clamped at the end; masked)
            pl.BlockSpec((BB, C_in, _HALO),
                         lambda b, t: (b, 0, jnp.minimum((t + 1) * hs, nb128 - 1))),
            # replicated folded weight / bias (constant index -> resident in VMEM)
            pl.BlockSpec((C_out, K * C_in), lambda b, t: (0, 0)),
            pl.BlockSpec((C_out, 1), lambda b, t: (0, 0)),
        ],
        out_specs=pl.BlockSpec((BB, C_out, TL), lambda b, t: (b, 0, t)),
        compiler_params=pltpu.CompilerParams(
            dimension_semantics=("parallel", "parallel"),
            vmem_limit_bytes=vmem_limit_bytes),
    )(x, x, x, w2, bias)

    return out


def _reference_forward(x, depthwise_weight, depthwise_bias,
                       pointwise_weight, pointwise_bias):
    """Pure-JAX f32 re-implementation of the PyTorch forward, for validation."""
    B, C_in, L = x.shape
    K = depthwise_weight.shape[-1]
    pad = K // 2
    L_out = L + 2 * pad - K + 1
    xp = jnp.pad(x, ((0, 0), (0, 0), (pad, pad)))
    dw = depthwise_bias[None, :, None] + sum(
        xp[:, :, t:t + L_out] * depthwise_weight[None, :, 0, t, None]
        for t in range(K))
    out = jnp.einsum("oc,bcl->bol", pointwise_weight[:, :, 0], dw,
                     precision=jax.lax.Precision.HIGHEST)
    return out + pointwise_bias[None, :, None]


def _run_case(name, seed, B, C_in, C_out, K, L, **kw):
    key = jax.random.PRNGKey(seed)
    k_x, k_dw, k_db, k_pw, k_pb = jax.random.split(key, 5)

    x = jax.random.normal(k_x, (B, C_in, L), jnp.float32)
    # kaiming_normal_ on the depthwise weight (fan_in = 1 * K for grouped conv).
    dw_w = jax.random.normal(k_dw, (C_in, 1, K), jnp.float32) * (2.0 / K) ** 0.5
    dw_b = 0.1 * jax.random.normal(k_db, (C_in,), jnp.float32)
    # Pointwise conv keeps PyTorch's default init scale ~ U(-1/sqrt(fan_in), +).
    bound = 1.0 / (C_in ** 0.5)
    pw_w = jax.random.uniform(k_pw, (C_out, C_in, 1), jnp.float32, -bound, bound)
    pw_b = jax.random.uniform(k_pb, (C_out,), jnp.float32, -bound, bound)

    out = depthwise_separable_conv1d(x, dw_w, dw_b, pw_w, pw_b, **kw)
    out = jax.block_until_ready(out)
    ref = _reference_forward(x, dw_w, dw_b, pw_w, pw_b)

    pad = K // 2
    L_out = L + 2 * pad - K + 1
    assert out.shape == (B, C_out, L_out), (name, out.shape)
    max_err = float(jnp.max(jnp.abs(out - ref)))
    mean_err = float(jnp.mean(jnp.abs(out - ref)))
    # bf16 MXU operands with f32 accumulation -> tolerance sized for bf16 rounding.
    assert jnp.allclose(out, ref, atol=1e-1, rtol=5e-2), (name, max_err, mean_err)
    assert mean_err < 3e-2, (name, mean_err)


if __name__ == "__main__":
    # 1) Default big-tile path; one length tile -> batch rows fused into one grid step.
    _run_case("single-tile batch-block", 0, B=2, C_in=64, C_out=96, K=5, L=256)
    # 2) Multi-tile path with halos and a ragged (non-multiple-of-128) tail.
    _run_case("multi-tile ragged tail", 1, B=2, C_in=32, C_out=48, K=7, L=200,
              l_tile=128)
    # 3) Even kernel_size (L_out = L + 1) -> exercises the clamped/masked edge tiles.
    _run_case("even kernel_size", 2, B=1, C_in=16, C_out=24, K=4, L=128, l_tile=128)

    print("KERNEL_OK")
</pallas_src>

<mosaic_0001>
module attributes {stable_mosaic.version = 11 : i64} {
  func.func @_dws_conv1d_kernel(%arg0: i32, %arg1: i32, %arg2: memref<2x64x128xf32, #tpu.memory_space<vmem>>, %arg3: memref<2x64x256xf32, #tpu.memory_space<vmem>>, %arg4: memref<2x64x128xf32, #tpu.memory_space<vmem>>, %arg5: memref<96x320xbf16, #tpu.memory_space<vmem>>, %arg6: memref<96x1xf32, #tpu.memory_space<vmem>>, %arg7: memref<2x96x256xf32, #tpu.memory_space<vmem>>) attributes {dimension_semantics = [#tpu.dimension_semantics<parallel>, #tpu.dimension_semantics<parallel>], iteration_bounds = array<i64: 1, 1>, scalar_prefetch = 0 : i64, scratch_operands = 0 : i64, tpu.core_type = #tpu.core_type<tc>, window_params = [{transform_indices = @transform_0, window_bounds = array<i64: 2, 64, 128>}, {transform_indices = @transform_1, window_bounds = array<i64: 2, 64, 256>}, {transform_indices = @transform_2, window_bounds = array<i64: 2, 64, 128>}, {pipeline_mode = #tpu.pipeline_mode<synchronous>, transform_indices = @transform_3, window_bounds = array<i64: 96, 320>}, {pipeline_mode = #tpu.pipeline_mode<synchronous>, transform_indices = @transform_4, window_bounds = array<i64: 96, 1>}, {transform_indices = @transform_5, window_bounds = array<i64: 2, 96, 256>}]} {
    %c256_i32 = arith.constant 256 : i32
    %0 = arith.muli %arg1, %c256_i32 : i32
    %1 = tpu.iota {dimensions = array<i32: 1>} : vector<1x256xi32>
    %2 = tpu.iota {dimensions = array<i32: 1>} : vector<1x128xi32>
    %c128_i32 = arith.constant 128 : i32
    %3 = arith.subi %0, %c128_i32 : i32
    %4 = vector.broadcast %3 : i32 to vector<1x128xi32>
    %5 = arith.addi %4, %2 : vector<1x128xi32>
    %c0_i32 = arith.constant 0 : i32
    %6 = vector.broadcast %c0_i32 : i32 to vector<1x128xi32>
    %7 = arith.cmpi sge, %5, %6 : vector<1x128xi32>
    %8 = vector.broadcast %0 : i32 to vector<1x256xi32>
    %9 = arith.addi %8, %1 : vector<1x256xi32>
    %c256_i32_0 = arith.constant 256 : i32
    %10 = vector.broadcast %c256_i32_0 : i32 to vector<1x256xi32>
    %11 = arith.cmpi slt, %9, %10 : vector<1x256xi32>
    %c256_i32_1 = arith.constant 256 : i32
    %12 = arith.addi %0, %c256_i32_1 : i32
    %13 = vector.broadcast %12 : i32 to vector<1x128xi32>
    %14 = arith.addi %13, %2 : vector<1x128xi32>
    %c256_i32_2 = arith.constant 256 : i32
    %15 = vector.broadcast %c256_i32_2 : i32 to vector<1x128xi32>
    %16 = arith.cmpi slt, %14, %15 : vector<1x128xi32>
    %c0 = arith.constant 0 : index
    %c0_3 = arith.constant 0 : index
    %17 = vector.load %arg5[%c0, %c0_3] : memref<96x320xbf16, #tpu.memory_space<vmem>>, vector<96x320xbf16>
    %c0_4 = arith.constant 0 : index
    %c0_5 = arith.constant 0 : index
    %c0_6 = arith.constant 0 : index
    %18 = vector.load %arg2[%c0_4, %c0_5, %c0_6] : memref<2x64x128xf32, #tpu.memory_space<vmem>>, vector<1x64x128xf32>
    %19 = vector.shape_cast %18 : vector<1x64x128xf32> to vector<64x128xf32>
    %20 = arith.truncf %19 : vector<64x128xf32> to vector<64x128xbf16>
    %c0_i32_7 = arith.constant 0 : i32
    %21 = arith.sitofp %c0_i32_7 : i32 to bf16
    %22 = vector.shape_cast %7 : vector<1x128xi1> to vector<1x128xi1>
    %23 = vector.broadcast %22 : vector<1x128xi1> to vector<64x128xi1>
    %24 = vector.broadcast %21 : bf16 to vector<64x128xbf16>
    %25 = arith.select %23, %20, %24 : vector<64x128xi1>, vector<64x128xbf16>
    %c0_8 = arith.constant 0 : index
    %c0_9 = arith.constant 0 : index
    %c0_10 = arith.constant 0 : index
    %26 = vector.load %arg3[%c0_8, %c0_9, %c0_10] : memref<2x64x256xf32, #tpu.memory_space<vmem>>, vector<1x64x256xf32>
    %27 = vector.shape_cast %26 : vector<1x64x256xf32> to vector<64x256xf32>
    %28 = arith.truncf %27 : vector<64x256xf32> to vector<64x256xbf16>
    %c0_i32_11 = arith.constant 0 : i32
    %29 = arith.sitofp %c0_i32_11 : i32 to bf16
    %30 = vector.shape_cast %11 : vector<1x256xi1> to vector<1x256xi1>
    %31 = vector.broadcast %30 : vector<1x256xi1> to vector<64x256xi1>
    %32 = vector.broadcast %29 : bf16 to vector<64x256xbf16>
    %33 = arith.select %31, %28, %32 : vector<64x256xi1>, vector<64x256xbf16>
    %c0_12 = arith.constant 0 : index
    %c0_13 = arith.constant 0 : index
    %c0_14 = arith.constant 0 : index
    %34 = vector.load %arg4[%c0_12, %c0_13, %c0_14] : memref<2x64x128xf32, #tpu.memory_space<vmem>>, vector<1x64x128xf32>
    %35 = vector.shape_cast %34 : vector<1x64x128xf32> to vector<64x128xf32>
    %36 = arith.truncf %35 : vector<64x128xf32> to vector<64x128xbf16>
    %c0_i32_15 = arith.constant 0 : i32
    %37 = arith.sitofp %c0_i32_15 : i32 to bf16
    %38 = vector.shape_cast %16 : vector<1x128xi1> to vector<1x128xi1>
    %39 = vector.broadcast %38 : vector<1x128xi1> to vector<64x128xi1>
    %40 = vector.broadcast %37 : bf16 to vector<64x128xbf16>
    %41 = arith.select %39, %36, %40 : vector<64x128xi1>, vector<64x128xbf16>
    %42 = tpu.concatenate %25, %33, %41 in 1 : vector<64x128xbf16>, vector<64x256xbf16>, vector<64x128xbf16> -> vector<64x512xbf16>
    %43 = vector.extract_strided_slice %42 {offsets = [0, 126], sizes = [64, 256], strides = [1, 1]} : vector<64x512xbf16> to vector<64x256xbf16>
    %44 = vector.extract_strided_slice %42 {offsets = [0, 127], sizes = [64, 256], strides = [1, 1]} : vector<64x512xbf16> to vector<64x256xbf16>
    %45 = vector.extract_strided_slice %42 {offsets = [0, 128], sizes = [64, 256], strides = [1, 1]} : vector<64x512xbf16> to vector<64x256xbf16>
    %46 = vector.extract_strided_slice %42 {offsets = [0, 129], sizes = [64, 256], strides = [1, 1]} : vector<64x512xbf16> to vector<64x256xbf16>
    %47 = vector.extract_strided_slice %42 {offsets = [0, 130], sizes = [64, 256], strides = [1, 1]} : vector<64x512xbf16> to vector<64x256xbf16>
    %48 = tpu.concatenate %43, %44, %45, %46, %47 in 0 : vector<64x256xbf16>, vector<64x256xbf16>, vector<64x256xbf16>, vector<64x256xbf16>, vector<64x256xbf16> -> vector<320x256xbf16>
    %c1 = arith.constant 1 : index
    %c0_16 = arith.constant 0 : index
    %c0_17 = arith.constant 0 : index
    %49 = vector.load %arg2[%c1, %c0_16, %c0_17] : memref<2x64x128xf32, #tpu.memory_space<vmem>>, vector<1x64x128xf32>
    %50 = vector.shape_cast %49 : vector<1x64x128xf32> to vector<64x128xf32>
    %51 = arith.truncf %50 : vector<64x128xf32> to vector<64x128xbf16>
    %c0_i32_18 = arith.constant 0 : i32
    %52 = arith.sitofp %c0_i32_18 : i32 to bf16
    %53 = vector.shape_cast %7 : vector<1x128xi1> to vector<1x128xi1>
    %54 = vector.broadcast %53 : vector<1x128xi1> to vector<64x128xi1>
    %55 = vector.broadcast %52 : bf16 to vector<64x128xbf16>
    %56 = arith.select %54, %51, %55 : vector<64x128xi1>, vector<64x128xbf16>
    %c1_19 = arith.constant 1 : index
    %c0_20 = arith.constant 0 : index
    %c0_21 = arith.constant 0 : index
    %57 = vector.load %arg3[%c1_19, %c0_20, %c0_21] : memref<2x64x256xf32, #tpu.memory_space<vmem>>, vector<1x64x256xf32>
    %58 = vector.shape_cast %57 : vector<1x64x256xf32> to vector<64x256xf32>
    %59 = arith.truncf %58 : vector<64x256xf32> to vector<64x256xbf16>
    %c0_i32_22 = arith.constant 0 : i32
    %60 = arith.sitofp %c0_i32_22 : i32 to bf16
    %61 = vector.shape_cast %11 : vector<1x256xi1> to vector<1x256xi1>
    %62 = vector.broadcast %61 : vector<1x256xi1> to vector<64x256xi1>
    %63 = vector.broadcast %60 : bf16 to vector<64x256xbf16>
    %64 = arith.select %62, %59, %63 : vector<64x256xi1>, vector<64x256xbf16>
    %c1_23 = arith.constant 1 : index
    %c0_24 = arith.constant 0 : index
    %c0_25 = arith.constant 0 : index
    %65 = vector.load %arg4[%c1_23, %c0_24, %c0_25] : memref<2x64x128xf32, #tpu.memory_space<vmem>>, vector<1x64x128xf32>
    %66 = vector.shape_cast %65 : vector<1x64x128xf32> to vector<64x128xf32>
    %67 = arith.truncf %66 : vector<64x128xf32> to vector<64x128xbf16>
    %c0_i32_26 = arith.constant 0 : i32
    %68 = arith.sitofp %c0_i32_26 : i32 to bf16
    %69 = vector.shape_cast %16 : vector<1x128xi1> to vector<1x128xi1>
    %70 = vector.broadcast %69 : vector<1x128xi1> to vector<64x128xi1>
    %71 = vector.broadcast %68 : bf16 to vector<64x128xbf16>
    %72 = arith.select %70, %67, %71 : vector<64x128xi1>, vector<64x128xbf16>
    %73 = tpu.concatenate %56, %64, %72 in 1 : vector<64x128xbf16>, vector<64x256xbf16>, vector<64x128xbf16> -> vector<64x512xbf16>
    %74 = vector.extract_strided_slice %73 {offsets = [0, 126], sizes = [64, 256], strides = [1, 1]} : vector<64x512xbf16> to vector<64x256xbf16>
    %75 = vector.extract_strided_slice %73 {offsets = [0, 127], sizes = [64, 256], strides = [1, 1]} : vector<64x512xbf16> to vector<64x256xbf16>
    %76 = vector.extract_strided_slice %73 {offsets = [0, 128], sizes = [64, 256], strides = [1, 1]} : vector<64x512xbf16> to vector<64x256xbf16>
    %77 = vector.extract_strided_slice %73 {offsets = [0, 129], sizes = [64, 256], strides = [1, 1]} : vector<64x512xbf16> to vector<64x256xbf16>
    %78 = vector.extract_strided_slice %73 {offsets = [0, 130], sizes = [64, 256], strides = [1, 1]} : vector<64x512xbf16> to vector<64x256xbf16>
    %79 = tpu.concatenate %74, %75, %76, %77, %78 in 0 : vector<64x256xbf16>, vector<64x256xbf16>, vector<64x256xbf16>, vector<64x256xbf16>, vector<64x256xbf16> -> vector<320x256xbf16>
    %80 = tpu.concatenate %48, %79 in 1 : vector<320x256xbf16>, vector<320x256xbf16> -> vector<320x512xbf16>
    %cst = arith.constant dense<0.000000e+00> : vector<96x512xf32>
    %81 = tpu.matmul %17, %80, %cst {dimension_numbers = #tpu.dot_dimension_numbers<[1], [0], [0], [1], [0, 0, 1, 1], [], []>} : vector<96x320xbf16>, vector<320x512xbf16>, vector<96x512xf32> -> vector<96x512xf32>
    %c0_27 = arith.constant 0 : index
    %c0_28 = arith.constant 0 : index
    %82 = vector.load %arg6[%c0_27, %c0_28] : memref<96x1xf32, #tpu.memory_space<vmem>>, vector<96x1xf32>
    %83 = vector.broadcast %82 : vector<96x1xf32> to vector<96x512xf32>
    %84 = arith.addf %81, %83 : vector<96x512xf32>
    %85 = vector.extract_strided_slice %84 {offsets = [0, 0], sizes = [96, 256], strides = [1, 1]} : vector<96x512xf32> to vector<96x256xf32>
    %c0_29 = arith.constant 0 : index
    %c0_30 = arith.constant 0 : index
    %c0_31 = arith.constant 0 : index
    %86 = vector.load %arg7[%c0_29, %c0_30, %c0_31] : memref<2x96x256xf32, #tpu.memory_space<vmem>>, vector<1x96x256xf32>
    %87 = vector.shape_cast %86 : vector<1x96x256xf32> to vector<96x256xf32>
    %88 = vector.shape_cast %85 : vector<96x256xf32> to vector<1x96x256xf32>
    tpu.vector_store %arg7[%c0_29, %c0_30, %c0_31], %88 {strides = array<i32>} : memref<2x96x256xf32, #tpu.memory_space<vmem>>, vector<1x96x256xf32>,
    %89 = vector.extract_strided_slice %84 {offsets = [0, 256], sizes = [96, 256], strides = [1, 1]} : vector<96x512xf32> to vector<96x256xf32>
    %c1_32 = arith.constant 1 : index
    %c0_33 = arith.constant 0 : index
    %c0_34 = arith.constant 0 : index
    %90 = vector.load %arg7[%c1_32, %c0_33, %c0_34] : memref<2x96x256xf32, #tpu.memory_space<vmem>>, vector<1x96x256xf32>
    %91 = vector.shape_cast %90 : vector<1x96x256xf32> to vector<96x256xf32>
    %92 = vector.shape_cast %89 : vector<96x256xf32> to vector<1x96x256xf32>
    tpu.vector_store %arg7[%c1_32, %c0_33, %c0_34], %92 {strides = array<i32>} : memref<2x96x256xf32, #tpu.memory_space<vmem>>, vector<1x96x256xf32>,
    return
  }
  func.func @transform_0(%arg0: i32, %arg1: i32) -> (i32, i32, i32) {
    %c2_i32 = arith.constant 2 : i32
    %0 = arith.muli %arg1, %c2_i32 : i32
    %c1_i32 = arith.constant 1 : i32
    %1 = arith.subi %0, %c1_i32 : i32
    %c0_i32 = arith.constant 0 : i32
    %2 = arith.maxsi %1, %c0_i32 : i32
    %c0_i32_0 = arith.constant 0 : i32
    %c0_i32_1 = arith.constant 0 : i32
    return %arg0, %c0_i32_0, %2 : i32, i32, i32
  }
  func.func @transform_1(%arg0: i32, %arg1: i32) -> (i32, i32, i32) {
    %c0_i32 = arith.constant 0 : i32
    %0 = arith.minsi %arg1, %c0_i32 : i32
    %c0_i32_0 = arith.constant 0 : i32
    %c0_i32_1 = arith.constant 0 : i32
    return %arg0, %c0_i32_0, %0 : i32, i32, i32
  }
  func.func @transform_2(%arg0: i32, %arg1: i32) -> (i32, i32, i32) {
    %c1_i32 = arith.constant 1 : i32
    %0 = arith.addi %arg1, %c1_i32 : i32
    %c2_i32 = arith.constant 2 : i32
    %1 = arith.muli %0, %c2_i32 : i32
    %c1_i32_0 = arith.constant 1 : i32
    %2 = arith.minsi %1, %c1_i32_0 : i32
    %c0_i32 = arith.constant 0 : i32
    %c0_i32_1 = arith.constant 0 : i32
    return %arg0, %c0_i32, %2 : i32, i32, i32
  }
  func.func @transform_3(%arg0: i32, %arg1: i32) -> (i32, i32) {
    %c0_i32 = arith.constant 0 : i32
    %c0_i32_0 = arith.constant 0 : i32
    %c0_i32_1 = arith.constant 0 : i32
    return %c0_i32, %c0_i32_0 : i32, i32
  }
  func.func @transform_4(%arg0: i32, %arg1: i32) -> (i32, i32) {
    %c0_i32 = arith.constant 0 : i32
    %c0_i32_0 = arith.constant 0 : i32
    %c0_i32_1 = arith.constant 0 : i32
    return %c0_i32, %c0_i32_0 : i32, i32
  }
  func.func @transform_5(%arg0: i32, %arg1: i32) -> (i32, i32, i32) {
    %c0_i32 = arith.constant 0 : i32
    %c0_i32_0 = arith.constant 0 : i32
    return %arg0, %c0_i32, %arg1 : i32, i32, i32
  }
}

</mosaic_0001>

<bundles_post_ra>
// kernel: tpu_custom_call.1
= control target key start
LH: loop header
LB: loop body
LE: loop exit
PB: predicated region body
PF: predicated region fallthrough
CT: control target
= control target key end

     0   :  { %10 = vsyncpa [#allocation3], 0  ;;  %s2894_s0 = inlined_call_operand.hbm [shape: f32[2,64,256], index: 0, kind: input, shape index: {}]   ;;  %s2895_s1 = inlined_call_operand.hbm [shape: f32[2,64,256], index: 1, kind: input, shape index: {}]   ;;  %s2896_s2 = inlined_call_operand.hbm [shape: f32[2,64,256], index: 2, kind: input, shape index: {}]   ;;  %s2897_s3 = inlined_call_operand.hbm [shape: bf16[96,320], index: 3, kind: input, shape index: {}]   ;;  %s2898_s4 = inlined_call_operand.vmem [shape: f32[96,1], index: 4, kind: input, shape index: {}]   ;;  %s2899_s5 = inlined_call_operand.hbm [shape: f32[2,96,256], index: 5, kind: output, shape index: {}]  }
   0x1   :  { %11 = vsyncpa [#allocation6], 0 }
   0x2   :  { %12 = vsyncpa [#allocation9], 0 }
   0x3   :  { %13 = vsyncpa [#allocation4], 0  ;;  %s1891_s18 = smov [#allocation5]   ;;  %s1770_s22 = scalar_lea.hbm %s2895_s1, 4096 }
   0x4   :  { %s37_s19 = sshll.u32 %s1891_s18, 4  ;;  %p1771_p0 = scmp.ne.s32.totalorder %s2895_s1, %s1770_s22  ;;  %s38_s19 = int_to_ptr.vmem [resolvable:$true] %s37_s19 }
   0x5   :  { %p1774_p1 = scmp.lt.u32.totalorder %s1770_s22, %s2895_s1 }
   0x7   :  { %p1776_p2 = pnand %p1774_p1, %p1771_p0 }
   0x9   :  { %1779 = shalt.err (!%p1776_p2)
}
   0xa   :  { %s1780_s27 = scalar_lea.vmem %s38_s19, 4096  ;;  %p1785_p4 = scmp.lt.s32.totalorder %s38_s19, %s38_s19 }
   0xb   :  { %p1781_p3 = scmp.ne.s32.totalorder %s38_s19, %s1780_s27  ;;  %p1786_p5 = scmp.lt.s32.totalorder %s1780_s27, %s1780_s27 }
   0xd   :  { %p1787_p6 = por %p1786_p5, %p1785_p4 }
   0xf   :  { %p1788_p7 = pnand %p1787_p6, %p1781_p3 }
  0x11   :  { %1791 = shalt.err (!%p1788_p7)
}
  0x12   :  { %s1892_s28 = smov 256   ;;  %s1893_s29 = smov 16  }
  0x13   :  { %43 = dma.hbm_to_vmem [thread:$0]  %s2895_s1, 4096, %s38_s19, [#allocation6], %s1892_s28, %s1892_s28, %s1893_s29  }
  0x14   :  { %s1894_s7 = smov [#allocation2]   ;;  %s1792_s11 = scalar_lea.hbm %s2894_s0, 2048 }
  0x15   :  { %s25_s8 = sshll.u32 %s1894_s7, 4  ;;  %p1793_p8 = scmp.ne.s32.totalorder %s2894_s0, %s1792_s11  ;;  %s26_s8 = int_to_ptr.vmem [resolvable:$true] %s25_s8 }
  0x16   :  { %s1794_s16 = scalar_lea.hbm %s2894_s0, 4096  ;;  %p1796_p10 = scmp.lt.u32.totalorder %s1792_s11, %s2894_s0 }
  0x17   :  { %p1795_p9 = scmp.lt.u32.totalorder %s1794_s16, %s1792_s11 }
  0x19   :  { %p1797_p11 = por %p1796_p10, %p1795_p9 }
  0x1b   :  { %p1798_p12 = pnand %p1797_p11, %p1793_p8 }
  0x1d   :  { %1801 = shalt.err (!%p1798_p12)
}
  0x1e   :  { %s1802_s1 = scalar_lea.vmem %s26_s8, 2048  ;;  %p1807_p0 = scmp.lt.s32.totalorder %s26_s8, %s26_s8 }
  0x1f   :  { %p1803_p13 = scmp.ne.s32.totalorder %s26_s8, %s1802_s1  ;;  %p1808_p1 = scmp.lt.s32.totalorder %s1802_s1, %s1802_s1 }
  0x21   :  { %p1809_p2 = por %p1808_p1, %p1807_p0 }
  0x23   :  { %p1810_p3 = pnand %p1809_p2, %p1803_p13 }
  0x25   :  { %1813 = shalt.err (!%p1810_p3)
}
  0x26   :  { %s1895_s19 = smov 128   ;;  %s1896_s20 = smov 8  }
  0x27   :  { %31 = dma.hbm_to_vmem [thread:$0]  %s2894_s0, 2048, %s26_s8, [#allocation3], %s1892_s28, %s1895_s19, %s1896_s20  }
  0x28   :  { %s54_s25 = scalar_lea.hbm %s2896_s2, 128  ;;  %s1897_s26 = smov [#allocation7]  }
  0x29   :  { %s55_s27 = sshll.u32 %s1897_s26, 4  ;;  %s1898_s30 = smov [#allocation8]   ;;  %s56_s27 = int_to_ptr.vmem [resolvable:$true] %s55_s27 }
  0x2a   :  { %s67_s6 = sshll.u32 %s1898_s30, 4  ;;  %s1838_s10 = scalar_lea.hbm %s2896_s2, 2176  ;;  %s68_s6 = int_to_ptr.vmem [resolvable:$true] %s67_s6 }
  0x2b   :  { %p1815_p4 = scmp.ne.s32.totalorder %s54_s25, %s1838_s10  ;;  %s1816_s13 = scalar_lea.hbm %s2896_s2, 4096 }
  0x2c   :  { %p1817_p5 = scmp.lt.u32.totalorder %s54_s25, %s2896_s2  ;;  %p1818_p6 = scmp.lt.u32.totalorder %s1816_s13, %s1838_s10 }
  0x2d   :  { %p1820_p8 = scmp.lt.u32.totalorder %s1838_s10, %s54_s25 }
  0x2e   :  { %p1819_p7 = por %p1818_p6, %p1817_p5 }
  0x30   :  { %p1821_p9 = por %p1820_p8, %p1819_p7 }
  0x32   :  { %p1822_p10 = pnand %p1821_p9, %p1815_p4 }
  0x34   :  { %1825 = shalt.err (!%p1822_p10)
}
  0x35   :  { %s1826_s8 = scalar_lea.vmem %s56_s27, 2048  ;;  %p1831_p12 = scmp.lt.s32.totalorder %s56_s27, %s56_s27 }
  0x36   :  { %p1827_p11 = scmp.ne.s32.totalorder %s56_s27, %s1826_s8  ;;  %p1832_p13 = scmp.lt.s32.totalorder %s1826_s8, %s1826_s8 }
  0x38   :  { %p1833_p0 = por %p1832_p13, %p1831_p12 }
  0x3a   :  { %p1834_p1 = pnand %p1833_p0, %p1827_p11 }
  0x3c   :  { %1837 = shalt.err (!%p1834_p1)
}
  0x3d   :  { %61 = dma.hbm_to_vmem [thread:$0]  %s54_s25, 2048, %s56_s27, [#allocation6], %s1892_s28, %s1895_s19, %s1896_s20  }
  0x3e   :  { %s1839_s2 = scalar_lea.hbm %s2897_s3, 2304 }
  0x3f   :  { %p1840_p2 = scmp.ne.s32.totalorder %s2897_s3, %s1839_s2  ;;  %p1843_p3 = scmp.lt.u32.totalorder %s1839_s2, %s2897_s3 }
  0x41   :  { %p1845_p4 = pnand %p1843_p3, %p1840_p2 }
  0x43   :  { %1848 = shalt.err (!%p1845_p4)
}
  0x44   :  { %s1849_s22 = scalar_lea.vmem %s68_s6, 2304  ;;  %p1854_p6 = scmp.lt.s32.totalorder %s68_s6, %s68_s6 }
  0x45   :  { %p1850_p5 = scmp.ne.s32.totalorder %s68_s6, %s1849_s22  ;;  %p1855_p7 = scmp.lt.s32.totalorder %s1849_s22, %s1849_s22 }
  0x47   :  { %p1856_p8 = por %p1855_p7, %p1854_p6 }
  0x49   :  { %p1857_p9 = pnand %p1856_p8, %p1850_p5 }
  0x4b   :  { %1860 = shalt.err (!%p1857_p9)
}
  0x4c   :  { %s1899_s19 = smov 192   ;;  %s1900_s20 = smov 12  }
  0x4d   :  { %73 = dma.hbm_to_vmem [thread:$0]  %s2897_s3, 2304, %s68_s6, [#allocation9], %s1899_s19, %s1899_s19, %s1900_s20  }
  0x4e   :  { %1883 = dma.done.wait [#allocation3], 2048  }
  0x4f   :  { %1884 = vsyncadd [#allocation3], 4294965248 }
  0x50   :  { %1885 = dma.done.wait [#allocation6], 6144  }
  0x51   :  { %1886 = vsyncadd [#allocation6], 4294961152 }
  0x52   :  { %1887 = dma.done.wait [#allocation9], 2304  }
  0x53   :  { %1888 = vsyncadd [#allocation9], 4294964992  ;;  %v156_v0 = vlaneseq  ;;  %v2900_v1 = vmov 0   ;;  %vm1902_vm0 = vmmov 1   ;;  %vm1903_vm2 = vmmov 0   ;;  %v392_v9 = vld [vmem:[#allocation5 + $0x80] sm:$0xff] }
  0x54   :  { %1744 = vset.pattern.permute.xlu0 %v2900_v1  ;;  %1745 = vset.pattern.permute.xlu1 %v2900_v1  ;;  %vm193_vm1 = vmpackc.low %vm1902_vm0, %vm1902_vm0  ;;  %v394_v10 = vld [vmem:[#allocation5 + $0x90] sm:$0xff]  ;;  %v165_v11 = vld [vmem:[#allocation5] sm:$0xff]  ;;  %s1904_s3 = smov 127   ;;  %s1905_s25 = smov 126   ;;  %vm274_vm7 = vcmask 1039360   ;;  %vm299_vm8 = vcmask 1031168  }
  0x55   :  { %v157_v2 = vshrl.u32 %v156_v0, 7  ;;  %vm154_vm3 = vmpackc.low %vm1903_vm2, %vm1903_vm2  ;;  %v194_v3 = vsel %vm193_vm1, 65537, %v2900_v1  ;;  %v408_v12 = vpack.c.bf16 %v394_v10, %v392_v9  ;;  %v167_v13 = vld [vmem:[#allocation5 + $0x10] sm:$0xff]  ;;  %v393_v14 = vld [vmem:[#allocation5 + $0x88] sm:$0xff]  ;;  %s1906_s26 = smov 125   ;;  %s1907_s27 = smov 2  }
  0x56   :  { %v155_v6 = vsel %vm154_vm3, 65537, %v2900_v1  ;;  %v395_v15 = vld [vmem:[#allocation5 + $0x98] sm:$0xff]  ;;  %v181_v17 = vpack.c.bf16 %v167_v13, %v165_v11  ;;  %v166_v19 = vld [vmem:[#allocation5 + $0x8] sm:$0xff]  ;;  %v375_v21 = vld [vmem:[#allocation2 + $0x40] sm:$0xff]  ;;  %vm693_vm9 = vcmask 15360   ;;  %s1908_s30 = smov 124  }
  0x57   :  { %v158_v4 = vsub.s32 0, %v157_v2  ;;  %v201_v5 = vsub.s32 4, %v157_v2  ;;  %v409_v18 = vpack.c.bf16 %v395_v15, %v393_v14  ;;  %v168_v20 = vld [vmem:[#allocation5 + $0x18] sm:$0xff]  ;;  %v376_v24 = vld [vmem:[#allocation2 + $0x48] sm:$0xff]  ;;  %v140_v25 = vld [vmem:[#allocation2] sm:$0xff]  ;;  %vm332_vm10 = vcmask 1022976  }
  0x58   :  { %v182_v23 = vpack.c.bf16 %v168_v20, %v166_v19  ;;  %v141_v26 = vld [vmem:[#allocation2 + $0x8] sm:$0xff]  ;;  %v383_v29 = vpack.c.bf16 %v376_v24, %v375_v21  ;;  %v172_v33 = vld [vmem:[#allocation5 + $0x38] sm:$0xff]  ;;  %v169_v34 = vld [vmem:[#allocation5 + $0x20] sm:$0xff]  ;;  %vm365_vm11 = vcmask 1014784   ;;  %vm1136_vm12 = vcmask 523264  }
  0x59   :  { %v2002_v7 = vrot.slane %v194_v3, %v158_v4  ;;  %v2004_v8 = vrot.slane %v194_v3, %v201_v5  ;;  %v2007_v16 = vrot.slane %v155_v6, %v158_v4  ;;  %v148_v31 = vpack.c.bf16 %v141_v26, %v140_v25  ;;  %v170_v32 = vld [vmem:[#allocation5 + $0x28] sm:$0xff]  ;;  %v171_v35 = vld [vmem:[#allocation5 + $0x30] sm:$0xff]  ;;  %v399_v41 = vld [vmem:[#allocation5 + $0xb8] sm:$0xff] }
  0x5a   :  { %v184_v37 = vpack.c.bf16 %v172_v33, %v170_v32  ;;  %v183_v39 = vpack.c.bf16 %v171_v35, %v169_v34  ;;  %v397_v40 = vld [vmem:[#allocation5 + $0xa8] sm:$0xff]  ;;  %v396_v42 = vld [vmem:[#allocation5 + $0xa0] sm:$0xff]  ;;  %v398_v43 = vld [vmem:[#allocation5 + $0xb0] sm:$0xff] }
  0x5b   :  { %vm203_vm4 = vcmp.ne.s16.totalorder %v2002_v7, 0  ;;  %vm204_vm5 = vcmp.ne.s16.totalorder %v2004_v8, 0  ;;  %vm160_vm6 = vcmp.ne.s16.totalorder %v2007_v16, 0  ;;  %v411_v45 = vpack.c.bf16 %v399_v41, %v397_v40  ;;  %v377_v48 = vld [vmem:[#allocation2 + $0x50] sm:$0xff]  ;;  %v378_v49 = vld [vmem:[#allocation2 + $0x58] sm:$0xff]  ;;  %v174_v54 = vld [vmem:[#allocation5 + $0x48] sm:$0xff] }
  0x5c   :  { %v2012_v22 = vsel %vm203_vm4, %v408_v12, 0  ;;  %v2018_v27 = vsel %vm203_vm4, %v181_v17, 0  ;;  %v2024_v28 = vsel %vm204_vm5, %v409_v18, 0  ;;  %v2029_v30 = vsel %vm204_vm5, %v182_v23, 0  ;;  %v142_v50 = vld [vmem:[#allocation2 + $0x10] sm:$0xff]  ;;  %v143_v51 = vld [vmem:[#allocation2 + $0x18] sm:$0xff] }
  0x5d   :  { %455 = vrot.lane.b32.xlu1 %v2012_v22, %s1904_s3  ;;  %252 = vrot.lane.b32.xlu0 %v2018_v27, %s1904_s3  ;;  %v2037_v36 = vsel %vm160_vm6, %v383_v29, 0  ;;  %v2041_v38 = vsel %vm160_vm6, %v148_v31, 0  ;;  %v2049_v44 = vsel %vm204_vm5, %v184_v37, 0  ;;  %v2053_v46 = vsel %vm203_vm4, %v183_v39, 0  ;;  %v176_v55 = vld [vmem:[#allocation5 + $0x58] sm:$0xff]  ;;  %v173_v58 = vld [vmem:[#allocation5 + $0x40] sm:$0xff] }
  0x5e   :  { %v410_v47 = vpack.c.bf16 %v398_v43, %v396_v42  ;;  %v2061_v52 = vsel %vm204_vm5, %v411_v45, 0  ;;  %v384_v53 = vpack.c.bf16 %v378_v49, %v377_v48  ;;  %v149_v57 = vpack.c.bf16 %v143_v51, %v142_v50  ;;  %v175_v59 = vld [vmem:[#allocation5 + $0x50] sm:$0xff]  ;;  %v401_v61 = vld [vmem:[#allocation5 + $0xc8] sm:$0xff]  ;;  %v403_v62 = vld [vmem:[#allocation5 + $0xd8] sm:$0xff] }
  0x5f   :  { %v186_v60 = vpack.c.bf16 %v176_v55, %v174_v54  ;;  %v185_v0 = vpack.c.bf16 %v175_v59, %v173_v58  ;;  %v400_v2 = vld [vmem:[#allocation5 + $0xc0] sm:$0xff]  ;;  %v402_v3 = vld [vmem:[#allocation5 + $0xd0] sm:$0xff]  ;;  %v380_v9 = vld [vmem:[#allocation2 + $0x68] sm:$0xff]  ;;  %v413_v11 = vpack.c.bf16 %v403_v62, %v401_v61 }
  0x60   :  { %v2065_v56 = vsel %vm203_vm4, %v410_v47, 0  ;;  %v2073_v63 = vsel %vm160_vm6, %v384_v53, 0  ;;  %v2077_v4 = vsel %vm160_vm6, %v149_v57, 0  ;;  %v379_v6 = vld [vmem:[#allocation2 + $0x60] sm:$0xff]  ;;  %v145_v13 = vld [vmem:[#allocation2 + $0x28] sm:$0xff]  ;;  %v412_v14 = vpack.c.bf16 %v402_v3, %v400_v2  ;;  %v180_v21 = vld [vmem:[#allocation5 + $0x78] sm:$0xff] }
  0x61   :  { %457 = vrot.lane.b32.xlu1 %v2024_v28, %s1904_s3  ;;  %254 = vrot.lane.b32.xlu0 %v2029_v30, %s1904_s3  ;;  %v2083_v5 = vsel %vm204_vm5, %v186_v60, 0  ;;  %v2089_v10 = vsel %vm203_vm4, %v185_v0, 0  ;;  %v144_v12 = vld [vmem:[#allocation2 + $0x20] sm:$0xff]  ;;  %v2097_v15 = vsel %vm204_vm5, %v413_v11, 0  ;;  %v385_v17 = vpack.c.bf16 %v380_v9, %v379_v6  ;;  %v178_v20 = vld [vmem:[#allocation5 + $0x68] sm:$0xff]  ;;  %v179_v24 = vld [vmem:[#allocation5 + $0x70] sm:$0xff] }
  0x62   :  { %v2101_v18 = vsel %vm203_vm4, %v412_v14, 0  ;;  %v150_v19 = vpack.c.bf16 %v145_v13, %v144_v12  ;;  %v177_v23 = vld [vmem:[#allocation5 + $0x60] sm:$0xff]  ;;  %v188_v26 = vpack.c.bf16 %v180_v21, %v178_v20  ;;  %v405_v32 = vld [vmem:[#allocation5 + $0xe8] sm:$0xff]  ;;  %v407_v33 = vld [vmem:[#allocation5 + $0xf8] sm:$0xff] }
  0x63   :  { %v2109_v25 = vsel %vm160_vm6, %v385_v17, 0  ;;  %v187_v31 = vpack.c.bf16 %v179_v24, %v177_v23  ;;  %v404_v34 = vld [vmem:[#allocation5 + $0xe0] sm:$0xff]  ;;  %v406_v35 = vld [vmem:[#allocation5 + $0xf0] sm:$0xff]  ;;  %v415_v39 = vpack.c.bf16 %v407_v33, %v405_v32  ;;  %v382_v43 = vld [vmem:[#allocation2 + $0x78] sm:$0xff] }
  0x64   :  { %v2113_v29 = vsel %vm160_vm6, %v150_v19, 0  ;;  %v2121_v37 = vsel %vm204_vm5, %v188_v26, 0  ;;  %v414_v41 = vpack.c.bf16 %v406_v35, %v404_v34  ;;  %v381_v42 = vld [vmem:[#allocation2 + $0x70] sm:$0xff]  ;;  %v147_v47 = vld [vmem:[#allocation2 + $0x38] sm:$0xff]  ;;  %v213_v7 = vld [vmem:[#allocation7] sm:$0xff] }
  0x65   :  { %453 = vrot.lane.b32.xlu1 %v2037_v36, %s1904_s3  ;;  %250 = vrot.lane.b32.xlu0 %v2041_v38, %s1904_s3  ;;  %v2125_v40 = vsel %vm203_vm4, %v187_v31, 0  ;;  %v146_v45 = vld [vmem:[#allocation2 + $0x30] sm:$0xff]  ;;  %v2133_v48 = vsel %vm204_vm5, %v415_v39, 0  ;;  %v386_v49 = vpack.c.bf16 %v382_v43, %v381_v42  ;;  %v214_v54 = vld [vmem:[#allocation7 + $0x8] sm:$0xff]  ;;  %v425_v57 = vld [vmem:[#allocation7 + $0x40] sm:$0xff] }
  0x66   :  { %v2137_v50 = vsel %vm203_vm4, %v414_v41, 0  ;;  %v151_v51 = vpack.c.bf16 %v147_v47, %v146_v45  ;;  %v221_v55 = vpack.c.bf16 %v214_v54, %v213_v7  ;;  %v426_v58 = vld [vmem:[#allocation7 + $0x48] sm:$0xff]  ;;  %v215_v62 = vld [vmem:[#allocation7 + $0x10] sm:$0xff]  ;;  %v216_v0 = vld [vmem:[#allocation7 + $0x18] sm:$0xff] }
  0x67   :  { %v2145_v53 = vsel %vm160_vm6, %v386_v49, 0  ;;  %v433_v59 = vpack.c.bf16 %v426_v58, %v425_v57  ;;  %v222_v2 = vpack.c.bf16 %v216_v0, %v215_v62  ;;  %v427_v3 = vld [vmem:[#allocation7 + $0x50] sm:$0xff]  ;;  %v428_v6 = vld [vmem:[#allocation7 + $0x58] sm:$0xff]  ;;  %v217_v13 = vld [vmem:[#allocation7 + $0x20] sm:$0xff] }
  0x68   :  { %v2149_v8 = vsel %vm160_vm6, %v151_v51, 0  ;;  %v2177_v60 = vsel %vm160_vm6, %v221_v55, 0  ;;  %v434_v9 = vpack.c.bf16 %v428_v6, %v427_v3  ;;  %v218_v14 = vld [vmem:[#allocation7 + $0x28] sm:$0xff]  ;;  %v429_v19 = vld [vmem:[#allocation7 + $0x60] sm:$0xff]  ;;  %v219_v34 = vld [vmem:[#allocation7 + $0x30] sm:$0xff] }
  0x69   :  { %260 = vrot.lane.b32.xlu1 %v2049_v44, %s1904_s3  ;;  %258 = vrot.lane.b32.xlu0 %v2053_v46, %s1904_s3  ;;  %v2185_v61 = vsel %vm160_vm6, %v433_v59, 0  ;;  %v2197_v11 = vsel %vm160_vm6, %v222_v2, 0  ;;  %v223_v17 = vpack.c.bf16 %v218_v14, %v217_v13  ;;  %v430_v20 = vld [vmem:[#allocation7 + $0x68] sm:$0xff]  ;;  %v220_v35 = vld [vmem:[#allocation7 + $0x38] sm:$0xff]  ;;  %v431_v42 = vld [vmem:[#allocation7 + $0x70] sm:$0xff] }
  0x6a   :  { %v2205_v12 = vsel %vm160_vm6, %v434_v9, 0  ;;  %v435_v21 = vpack.c.bf16 %v430_v20, %v429_v19  ;;  %v224_v41 = vpack.c.bf16 %v220_v35, %v219_v34  ;;  %v432_v43 = vld [vmem:[#allocation7 + $0x78] sm:$0xff] }
  0x6b   :  { %v2217_v23 = vsel %vm160_vm6, %v223_v17, 0  ;;  %v436_v47 = vpack.c.bf16 %v432_v43, %v431_v42 }
  0x6c   :  { %v2225_v24 = vsel %vm160_vm6, %v435_v21, 0  ;;  %v2259_v51 = vsel %vm160_vm6, %v224_v41, 0 }
  0x6d   :  { %463 = vrot.lane.b32.xlu1 %v2061_v52, %s1904_s3  ;;  %461 = vrot.lane.b32.xlu0 %v2065_v56, %s1904_s3  ;;  %v2269_v54 = vsel %vm160_vm6, %v436_v47, 0 }
  0x71   :  { %459 = vrot.lane.b32.xlu1 %v2073_v63, %s1904_s3  ;;  %256 = vrot.lane.b32.xlu0 %v2077_v4, %s1904_s3 }
  0x75   :  { %266 = vrot.lane.b32.xlu1 %v2083_v5, %s1904_s3  ;;  %264 = vrot.lane.b32.xlu0 %v2089_v10, %s1904_s3 }
  0x79   :  { %469 = vrot.lane.b32.xlu1 %v2097_v15, %s1904_s3  ;;  %467 = vrot.lane.b32.xlu0 %v2101_v18, %s1904_s3 }
  0x7d   :  { %465 = vrot.lane.b32.xlu1 %v2109_v25, %s1904_s3  ;;  %262 = vrot.lane.b32.xlu0 %v2113_v29, %s1904_s3 }
  0x81   :  { %272 = vrot.lane.b32.xlu1 %v2121_v37, %s1904_s3  ;;  %270 = vrot.lane.b32.xlu0 %v2125_v40, %s1904_s3 }
  0x85   :  { %475 = vrot.lane.b32.xlu1 %v2133_v48, %s1904_s3  ;;  %473 = vrot.lane.b32.xlu0 %v2137_v50, %s1904_s3 }
  0x89   :  { %471 = vrot.lane.b32.xlu1 %v2145_v53, %s1904_s3  ;;  %268 = vrot.lane.b32.xlu0 %v2149_v8, %s1904_s3 }
  0x8d   :  { %285 = vrot.lane.b32.xlu1 %v2029_v30, %s1905_s25  ;;  %283 = vrot.lane.b32.xlu0 %v2018_v27, %s1905_s25 }
  0x91   :  { %487 = vrot.lane.b32.xlu1 %v2024_v28, %s1905_s25  ;;  %485 = vrot.lane.b32.xlu0 %v2012_v22, %s1905_s25 }
  0x95   :  { %289 = vrot.lane.b32.xlu1 %v2049_v44, %s1905_s25  ;;  %287 = vrot.lane.b32.xlu0 %v2053_v46, %s1905_s25 }
  0x99   :  { %491 = vrot.lane.b32.xlu1 %v2061_v52, %s1905_s25  ;;  %489 = vrot.lane.b32.xlu0 %v2065_v56, %s1905_s25 }
  0x9d   :  { %293 = vrot.lane.b32.xlu1 %v2083_v5, %s1905_s25  ;;  %291 = vrot.lane.b32.xlu0 %v2089_v10, %s1905_s25 }
  0xa1   :  { %495 = vrot.lane.b32.xlu1 %v2097_v15, %s1905_s25  ;;  %493 = vrot.lane.b32.xlu0 %v2101_v18, %s1905_s25 }
  0xa5   :  { %297 = vrot.lane.b32.xlu1 %v2121_v37, %s1905_s25  ;;  %295 = vrot.lane.b32.xlu0 %v2125_v40, %s1905_s25 }
  0xa9   :  { %499 = vrot.lane.b32.xlu1 %v2133_v48, %s1905_s25  ;;  %497 = vrot.lane.b32.xlu0 %v2137_v50, %s1905_s25 }
  0xad   :  { %310 = vrot.lane.b32.xlu1 %v2029_v30, %s1906_s26  ;;  %308 = vrot.lane.b32.xlu0 %v2018_v27, %s1906_s26 }
  0xb1   :  { %509 = vrot.lane.b32.xlu1 %v2012_v22, %s1906_s26  ;;  %312 = vrot.lane.b32.xlu0 %v2177_v60, %s1906_s26 }
  0xb5   :  { %513 = vrot.lane.b32.xlu1 %v2185_v61, %s1906_s26  ;;  %511 = vrot.lane.b32.xlu0 %v2024_v28, %s1906_s26 }
  0xb9   :  { %316 = vrot.lane.b32.xlu1 %v2049_v44, %s1906_s26  ;;  %314 = vrot.lane.b32.xlu0 %v2053_v46, %s1906_s26 }
  0xbd   :  { %515 = vrot.lane.b32.xlu1 %v2065_v56, %s1906_s26  ;;  %318 = vrot.lane.b32.xlu0 %v2197_v11, %s1906_s26 }
  0xc1   :  { %519 = vrot.lane.b32.xlu1 %v2205_v12, %s1906_s26  ;;  %517 = vrot.lane.b32.xlu0 %v2061_v52, %s1906_s26 }
  0xc5   :  { %322 = vrot.lane.b32.xlu1 %v2083_v5, %s1906_s26  ;;  %320 = vrot.lane.b32.xlu0 %v2089_v10, %s1906_s26 }
  0xc9   :  { %521 = vrot.lane.b32.xlu1 %v2101_v18, %s1906_s26  ;;  %324 = vrot.lane.b32.xlu0 %v2217_v23, %s1906_s26 }
  0xcd   :  { %525 = vrot.lane.b32.xlu1 %v2225_v24, %s1906_s26  ;;  %523 = vrot.lane.b32.xlu0 %v2097_v15, %s1906_s26 }
  0xcf   :  { %v2231_v26 = vpop.permute.xlu1 %455  ;;  %v2233_v31 = vpop.permute.xlu0 %252 }
  0xd1   :  { %577 = vrot.lane.b32.xlu1 %v2029_v30, %s1907_s27  ;;  %575 = vrot.lane.b32.xlu0 %v2018_v27, %s1907_s27 }
  0xd3   :  { %v2239_v32 = vpop.permute.xlu1 %457  ;;  %v2241_v33 = vpop.permute.xlu0 %254 }
  0xd4   :  { %v276_v35 = vsel %vm274_vm7, %v2233_v31, %v2241_v33 }
  0xd5   :  { %778 = vrot.lane.b32.xlu1 %v2024_v28, %s1907_s27  ;;  %776 = vrot.lane.b32.xlu0 %v2012_v22, %s1907_s27 }
  0xd7   :  { %v2247_v39 = vpop.permute.xlu1 %453  ;;  %v2249_v45 = vpop.permute.xlu0 %250 }
  0xd8   :  { %v275_v47 = vsel %vm274_vm7, %v2249_v45, %v2233_v31 }
  0xd9   :  { %328 = vrot.lane.b32.xlu1 %v2121_v37, %s1906_s26  ;;  %326 = vrot.lane.b32.xlu0 %v2125_v40, %s1906_s26 }
  0xdb   :  { %v2255_v49 = vpop.permute.xlu1 %260  ;;  %v2261_v7 = vpop.permute.xlu0 %258 }
  0xdd   :  { %527 = vrot.lane.b32.xlu1 %v2137_v50, %s1906_s26  ;;  %330 = vrot.lane.b32.xlu0 %v2259_v51, %s1906_s26 }
  0xdf   :  { %v2271_v55 = vpop.permute.xlu1 %463  ;;  %v2273_v57 = vpop.permute.xlu0 %461 }
  0xe0   :  { %v480_v31 = vsel %vm274_vm7, %v2273_v57, %v2271_v55 }
  0xe1   :  { %531 = vrot.lane.b32.xlu1 %v2269_v54, %s1906_s26  ;;  %529 = vrot.lane.b32.xlu0 %v2133_v48, %s1906_s26 }
  0xe3   :  { %v2279_v58 = vpop.permute.xlu1 %459  ;;  %v2281_v59 = vpop.permute.xlu0 %256 }
  0xe5   :  { %774 = vrot.lane.b32.xlu1 %v2037_v36, %s1907_s27  ;;  %573 = vrot.lane.b32.xlu0 %v2041_v38, %s1907_s27 }
  0xe7   :  { %v2287_v16 = vpop.permute.xlu1 %266  ;;  %v2289_v62 = vpop.permute.xlu0 %264 }
  0xe9   :  { %583 = vrot.lane.b32.xlu1 %v2049_v44, %s1907_s27  ;;  %581 = vrot.lane.b32.xlu0 %v2053_v46, %s1907_s27 }
  0xeb   :  { %v2295_v0 = vpop.permute.xlu1 %469  ;;  %v2297_v2 = vpop.permute.xlu0 %467 }
  0xed   :  { %784 = vrot.lane.b32.xlu1 %v2061_v52, %s1907_s27  ;;  %782 = vrot.lane.b32.xlu0 %v2065_v56, %s1907_s27 }
  0xef   :  { %v2303_v36 = vpop.permute.xlu1 %465  ;;  %v2305_v38 = vpop.permute.xlu0 %262 }
  0xf1   :  { %780 = vrot.lane.b32.xlu1 %v2073_v63, %s1907_s27  ;;  %579 = vrot.lane.b32.xlu0 %v2077_v4, %s1907_s27 }
  0xf3   :  { %v2311_v3 = vpop.permute.xlu1 %272  ;;  %v2313_v6 = vpop.permute.xlu0 %270 }
  0xf5   :  { %589 = vrot.lane.b32.xlu1 %v2083_v5, %s1907_s27  ;;  %587 = vrot.lane.b32.xlu0 %v2089_v10, %s1907_s27 }
  0xf7   :  { %v2319_v9 = vpop.permute.xlu1 %475  ;;  %v2321_v13 = vpop.permute.xlu0 %473 }
  0xf9   :  { %790 = vrot.lane.b32.xlu1 %v2097_v15, %s1907_s27  ;;  %788 = vrot.lane.b32.xlu0 %v2101_v18, %s1907_s27 }
  0xfb   :  { %v2327_v63 = vpop.permute.xlu1 %471  ;;  %v2329_v4 = vpop.permute.xlu0 %268 }
  0xfd   :  { %786 = vrot.lane.b32.xlu1 %v2109_v25, %s1907_s27  ;;  %585 = vrot.lane.b32.xlu0 %v2113_v29, %s1907_s27 }
  0xff   :  { %v2335_v14 = vpop.permute.xlu1 %285  ;;  %v2337_v17 = vpop.permute.xlu0 %283 }
 0x101   :  { %595 = vrot.lane.b32.xlu1 %v2121_v37, %s1907_s27  ;;  %593 = vrot.lane.b32.xlu0 %v2125_v40, %s1907_s27 }
 0x103   :  { %v2343_v19 = vpop.permute.xlu1 %487  ;;  %v2345_v20 = vpop.permute.xlu0 %485 }
 0x105   :  { %796 = vrot.lane.b32.xlu1 %v2133_v48, %s1907_s27  ;;  %794 = vrot.lane.b32.xlu0 %v2137_v50, %s1907_s27 }
 0x107   :  { %v2351_v25 = vpop.permute.xlu1 %289  ;;  %v2353_v29 = vpop.permute.xlu0 %287 }
 0x109   :  { %792 = vrot.lane.b32.xlu1 %v2145_v53, %s1907_s27  ;;  %591 = vrot.lane.b32.xlu0 %v2149_v8, %s1907_s27  ;;  %v478_v8 = vsel %vm274_vm7, %v2231_v26, %v2239_v32 }
 0x10b   :  { %v2359_v21 = vpop.permute.xlu1 %491  ;;  %v2361_v34 = vpop.permute.xlu0 %489 }
 0x10d   :  { %601 = vrot.lane.b32.xlu1 %v2241_v33, %s1907_s27  ;;  %599 = vrot.lane.b32.xlu0 %v276_v35, %s1907_s27  ;;  %v477_v33 = vsel %vm274_vm7, %v2247_v39, %v2231_v26 }
 0x10f   :  { %v2369_v41 = vpop.permute.xlu1 %293  ;;  %v2371_v53 = vpop.permute.xlu0 %291 }
 0x111   :  { %802 = vrot.lane.b32.xlu1 %v2239_v32, %s1907_s27  ;;  %800 = vrot.lane.b32.xlu0 %v478_v8, %s1907_s27  ;;  %v278_v8 = vsel %vm274_vm7, %v2261_v7, %v2255_v49 }
 0x113   :  { %v2379_v42 = vpop.permute.xlu1 %495  ;;  %v2381_v43 = vpop.permute.xlu0 %493 }
 0x115   :  { %798 = vrot.lane.b32.xlu1 %v477_v33, %s1907_s27  ;;  %597 = vrot.lane.b32.xlu0 %v275_v47, %s1907_s27  ;;  %v277_v47 = vsel %vm274_vm7, %v2281_v59, %v2261_v7  ;;  %v482_v59 = vsel %vm274_vm7, %v2297_v2, %v2295_v0 }
 0x117   :  { %v2391_v35 = vpop.permute.xlu1 %297  ;;  %v2393_v32 = vpop.permute.xlu0 %295 }
 0x119   :  { %607 = vrot.lane.b32.xlu1 %v2255_v49, %s1907_s27  ;;  %605 = vrot.lane.b32.xlu0 %v278_v8, %s1907_s27  ;;  %v479_v49 = vsel %vm274_vm7, %v2279_v58, %v2273_v57  ;;  %v280_v57 = vsel %vm274_vm7, %v2289_v62, %v2287_v16 }
 0x11b   :  { %v2401_v26 = vpop.permute.xlu1 %499  ;;  %v2403_v39 = vpop.permute.xlu0 %497 }
 0x11d   :  { %808 = vrot.lane.b32.xlu1 %v2271_v55, %s1907_s27  ;;  %806 = vrot.lane.b32.xlu0 %v480_v31, %s1907_s27 }
 0x11f   :  { %v2411_v45 = vpop.permute.xlu1 %310  ;;  %v2416_v33 = vpop.permute.xlu0 %308 }
 0x121   :  { %804 = vrot.lane.b32.xlu1 %v479_v49, %s1907_s27  ;;  %603 = vrot.lane.b32.xlu0 %v277_v47, %s1907_s27  ;;  %v279_v47 = vsel %vm274_vm7, %v2305_v38, %v2289_v62  ;;  %v484_v38 = vsel %vm274_vm7, %v2321_v13, %v2319_v9 }
 0x123   :  { %v2423_v8 = vpop.permute.xlu1 %509  ;;  %v2425_v55 = vpop.permute.xlu0 %312 }
 0x125   :  { %613 = vrot.lane.b32.xlu1 %v2287_v16, %s1907_s27  ;;  %611 = vrot.lane.b32.xlu0 %v280_v57, %s1907_s27  ;;  %v481_v16 = vsel %vm274_vm7, %v2303_v36, %v2297_v2  ;;  %v282_v2 = vsel %vm274_vm7, %v2313_v6, %v2311_v3 }
 0x127   :  { %v2433_v58 = vpop.permute.xlu1 %513  ;;  %v2435_v7 = vpop.permute.xlu0 %511 }
 0x129   :  { %814 = vrot.lane.b32.xlu1 %v2295_v0, %s1907_s27  ;;  %812 = vrot.lane.b32.xlu0 %v482_v59, %s1907_s27 }
 0x12b   :  { %v2443_v31 = vpop.permute.xlu1 %316  ;;  %v2448_v49 = vpop.permute.xlu0 %314 }
 0x12d   :  { %810 = vrot.lane.b32.xlu1 %v481_v16, %s1907_s27  ;;  %609 = vrot.lane.b32.xlu0 %v279_v47, %s1907_s27  ;;  %v281_v47 = vsel %vm274_vm7, %v2329_v4, %v2313_v6  ;;  %v501_v4 = vsel %vm299_vm8, %v2345_v20, %v2343_v19 }
 0x12f   :  { %v2455_v57 = vpop.permute.xlu1 %515  ;;  %v2457_v0 = vpop.permute.xlu0 %318 }
 0x131   :  { %619 = vrot.lane.b32.xlu1 %v2311_v3, %s1907_s27  ;;  %617 = vrot.lane.b32.xlu0 %v282_v2, %s1907_s27  ;;  %v483_v3 = vsel %vm274_vm7, %v2327_v63, %v2321_v13  ;;  %v300_v13 = vsel %vm299_vm8, %v2337_v17, %v2335_v14 }
 0x133   :  { %v2465_v36 = vpop.permute.xlu1 %519  ;;  %v2467_v62 = vpop.permute.xlu0 %517 }
 0x135   :  { %820 = vrot.lane.b32.xlu1 %v2319_v9, %s1907_s27  ;;  %818 = vrot.lane.b32.xlu0 %v484_v38, %s1907_s27 }
 0x137   :  { %v2475_v59 = vpop.permute.xlu1 %322  ;;  %v2480_v16 = vpop.permute.xlu0 %320 }
 0x139   :  { %816 = vrot.lane.b32.xlu1 %v483_v3, %s1907_s27  ;;  %615 = vrot.lane.b32.xlu0 %v281_v47, %s1907_s27 }
 0x13b   :  { %v2487_v9 = vpop.permute.xlu1 %521  ;;  %v2489_v2 = vpop.permute.xlu0 %324 }
 0x13d   :  { %625 = vrot.lane.b32.xlu1 %v2335_v14, %s1907_s27  ;;  %623 = vrot.lane.b32.xlu0 %v300_v13, %s1907_s27 }
 0x13f   :  { %v2497_v63 = vpop.permute.xlu1 %525  ;;  %v2499_v6 = vpop.permute.xlu0 %523 }
 0x141   :  { %826 = vrot.lane.b32.xlu1 %v2343_v19, %s1907_s27  ;;  %824 = vrot.lane.b32.xlu0 %v501_v4, %s1907_s27  ;;  %v301_v19 = vsel %vm299_vm8, %v2353_v29, %v2351_v25 }
 0x143   :  { %v578_v38 = vpop.permute.xlu1 %577  ;;  %v576_v3 = vpop.permute.xlu0 %575 }
 0x144   :  { %v695_v14 = vsel %vm693_vm9, %v576_v3, %v578_v38 }
 0x145   :  { %822 = vrot.lane.b32.xlu1 %v2345_v20, %s1907_s27  ;;  %621 = vrot.lane.b32.xlu0 %v2337_v17, %s1907_s27  ;;  %v502_v17 = vsel %vm299_vm8, %v2361_v34, %v2359_v21 }
 0x146   :  { %1155 = vmatprep.subr.bf16.mxu0 %v695_v14 }
 0x147   :  { %v779_v47 = vpop.permute.xlu1 %778  ;;  %v777_v13 = vpop.permute.xlu0 %776 }
 0x148   :  { %v895_v4 = vsel %vm693_vm9, %v777_v13, %v779_v47 }
 0x149   :  { %631 = vrot.lane.b32.xlu1 %v2351_v25, %s1907_s27  ;;  %629 = vrot.lane.b32.xlu0 %v301_v19, %s1907_s27 }
 0x14a   :  { %1341 = vmatprep.subr.bf16.mxu1 %v895_v4 }
 0x14b   :  { %v2519_v20 = vpop.permute.xlu1 %328  ;;  %v2521_v38 = vpop.permute.xlu0 %326 }
 0x14d   :  { %832 = vrot.lane.b32.xlu1 %v2359_v21, %s1907_s27  ;;  %830 = vrot.lane.b32.xlu0 %v502_v17, %s1907_s27 }
 0x14f   :  { %v2529_v14 = vpop.permute.xlu1 %527  ;;  %v2531_v25 = vpop.permute.xlu0 %330 }
 0x151   :  { %343 = vrot.lane.b32.xlu1 %v2029_v30, %s1908_s30  ;;  %341 = vrot.lane.b32.xlu0 %v2018_v27, %s1908_s30 }
 0x153   :  { %v2537_v47 = vpop.permute.xlu1 %531  ;;  %v2539_v19 = vpop.permute.xlu0 %529 }
 0x155   :  { %541 = vrot.lane.b32.xlu1 %v2012_v22, %s1908_s30  ;;  %345 = vrot.lane.b32.xlu0 %v2177_v60, %s1908_s30 }
 0x157   :  { %v775_v21 = vpop.permute.xlu1 %774  ;;  %v574_v4 = vpop.permute.xlu0 %573 }
 0x158   :  { %v894_v17 = vsel %vm693_vm9, %v775_v21, %v777_v13  ;;  %v694_v30 = vsel %vm693_vm9, %v574_v4, %v576_v3 }
 0x159   :  { %545 = vrot.lane.b32.xlu1 %v2185_v61, %s1908_s30  ;;  %1342 = vmatpush1.bf16.msra.mxu1 %v894_v17 }
 0x15a   :  { %543 = vrot.lane.b32.xlu0 %v2024_v28, %s1908_s30  ;;  %1156 = vmatpush1.bf16.msra.mxu0 %v694_v30  ;;  %v302_v28 = vsel %vm299_vm8, %v2371_v53, %v2369_v41 }
 0x15b   :  { %v584_v27 = vpop.permute.xlu1 %583  ;;  %v582_v1 = vpop.permute.xlu0 %581 }
 0x15c   :  { %v697_v22 = vsel %vm693_vm9, %v582_v1, %v584_v27 }
 0x15d   :  { %828 = vrot.lane.b32.xlu1 %v2361_v34, %s1907_s27  ;;  %1157 = vmatprep.subr.bf16.mxu0 %v697_v22 }
 0x15e   :  { %627 = vrot.lane.b32.xlu0 %v2353_v29, %s1907_s27  ;;  %v503_v29 = vsel %vm299_vm8, %v2381_v43, %v2379_v42 }
 0x15f   :  { %v785_v60 = vpop.permute.xlu1 %784  ;;  %v783_v61 = vpop.permute.xlu0 %782 }
 0x160   :  { %v897_v3 = vsel %vm693_vm9, %v783_v61, %v785_v60 }
 0x161   :  { %637 = vrot.lane.b32.xlu1 %v2369_v41, %s1907_s27  ;;  %1343 = vmatprep.subr.bf16.mxu1 %v897_v3 }
 0x162   :  { %635 = vrot.lane.b32.xlu0 %v302_v28, %s1907_s27 }
 0x163   :  { %v781_v34 = vpop.permute.xlu1 %780  ;;  %v580_v13 = vpop.permute.xlu0 %579 }
 0x164   :  { %v896_v21 = vsel %vm693_vm9, %v781_v34, %v783_v61  ;;  %v696_v4 = vsel %vm693_vm9, %v580_v13, %v582_v1 }
 0x165   :  { %838 = vrot.lane.b32.xlu1 %v2379_v42, %s1907_s27  ;;  %1344 = vmatpush1.bf16.msra.mxu1 %v896_v21 }
 0x166   :  { %836 = vrot.lane.b32.xlu0 %v503_v29, %s1907_s27  ;;  %1158 = vmatpush1.bf16.msra.mxu0 %v696_v4 }
 0x167   :  { %v590_v41 = vpop.permute.xlu1 %589  ;;  %v588_v17 = vpop.permute.xlu0 %587 }
 0x168   :  { %v699_v30 = vsel %vm693_vm9, %v588_v17, %v590_v41 }
 0x169   :  { %349 = vrot.lane.b32.xlu1 %v2049_v44, %s1908_s30  ;;  %1159 = vmatprep.subr.bf16.mxu0 %v699_v30 }
 0x16a   :  { %347 = vrot.lane.b32.xlu0 %v2053_v46, %s1908_s30 }
 0x16b   :  { %v791_v27 = vpop.permute.xlu1 %790  ;;  %v789_v22 = vpop.permute.xlu0 %788 }
 0x16c   :  { %v899_v1 = vsel %vm693_vm9, %v789_v22, %v791_v27 }
 0x16d   :  { %547 = vrot.lane.b32.xlu1 %v2065_v56, %s1908_s30  ;;  %1345 = vmatprep.subr.bf16.mxu1 %v899_v1  ;;  %v334_v1 = vsel %vm332_vm10, %v2411_v45, %v2425_v55 }
 0x16e   :  { %351 = vrot.lane.b32.xlu0 %v2197_v11, %s1908_s30 }
 0x16f   :  { %v787_v42 = vpop.permute.xlu1 %786  ;;  %v586_v60 = vpop.permute.xlu0 %585 }
 0x170   :  { %v898_v44 = vsel %vm693_vm9, %v787_v42, %v789_v22  ;;  %v698_v46 = vsel %vm693_vm9, %v586_v60, %v588_v17 }
 0x171   :  { %551 = vrot.lane.b32.xlu1 %v2205_v12, %s1908_s30  ;;  %1346 = vmatpush1.bf16.msra.mxu1 %v898_v44  ;;  %v534_v44 = vsel %vm332_vm10, %v2435_v7, %v2433_v58 }
 0x172   :  { %549 = vrot.lane.b32.xlu0 %v2061_v52, %s1908_s30  ;;  %1160 = vmatpush1.bf16.msra.mxu0 %v698_v46  ;;  %v303_v52 = vsel %vm299_vm8, %v2393_v32, %v2391_v35  ;;  %v533_v46 = vsel %vm332_vm10, %v2423_v8, %v2435_v7 }
 0x173   :  { %v596_v56 = vpop.permute.xlu1 %595  ;;  %v594_v61 = vpop.permute.xlu0 %593 }
 0x174   :  { %v701_v11 = vsel %vm693_vm9, %v594_v61, %v596_v56 }
 0x175   :  { %834 = vrot.lane.b32.xlu1 %v2381_v43, %s1907_s27  ;;  %1161 = vmatprep.subr.bf16.mxu0 %v701_v11 }
 0x176   :  { %633 = vrot.lane.b32.xlu0 %v2371_v53, %s1907_s27  ;;  %v504_v53 = vsel %vm299_vm8, %v2403_v39, %v2401_v26 }
 0x177   :  { %v797_v28 = vpop.permute.xlu1 %796  ;;  %v795_v12 = vpop.permute.xlu0 %794 }
 0x178   :  { %v901_v3 = vsel %vm693_vm9, %v795_v12, %v797_v28 }
 0x179   :  { %643 = vrot.lane.b32.xlu1 %v2391_v35, %s1907_s27  ;;  %1347 = vmatprep.subr.bf16.mxu1 %v901_v3 }
 0x17a   :  { %641 = vrot.lane.b32.xlu0 %v303_v52, %s1907_s27 }
 0x17b   :  { %v793_v43 = vpop.permute.xlu1 %792  ;;  %v592_v34 = vpop.permute.xlu0 %591 }
 0x17c   :  { %v900_v13 = vsel %vm693_vm9, %v793_v43, %v795_v12  ;;  %v700_v21 = vsel %vm693_vm9, %v592_v34, %v594_v61 }
 0x17d   :  { %844 = vrot.lane.b32.xlu1 %v2401_v26, %s1907_s27  ;;  %1348 = vmatpush1.bf16.msra.mxu1 %v900_v13 }
 0x17e   :  { %842 = vrot.lane.b32.xlu0 %v504_v53, %s1907_s27  ;;  %1162 = vmatpush1.bf16.msra.mxu0 %v700_v21  ;;  %v536_v53 = vsel %vm332_vm10, %v2467_v62, %v2465_v36  ;;  %v535_v21 = vsel %vm332_vm10, %v2455_v57, %v2467_v62  ;;  %v338_v62 = vsel %vm332_vm10, %v2475_v59, %v2489_v2 }
 0x17f   :  { %v602_v35 = vpop.permute.xlu1 %601  ;;  %v600_v29 = vpop.permute.xlu0 %599 }
 0x180   :  { %v703_v4 = vsel %vm693_vm9, %v600_v29, %v602_v35 }
 0x181   :  { %355 = vrot.lane.b32.xlu1 %v2083_v5, %s1908_s30  ;;  %1163 = vmatprep.subr.bf16.mxu0 %v703_v4 }
 0x182   :  { %353 = vrot.lane.b32.xlu0 %v2089_v10, %s1908_s30 }
 0x183   :  { %v803_v41 = vpop.permute.xlu1 %802  ;;  %v801_v17 = vpop.permute.xlu0 %800 }
 0x184   :  { %v903_v26 = vsel %vm693_vm9, %v801_v17, %v803_v41 }
 0x185   :  { %553 = vrot.lane.b32.xlu1 %v2101_v18, %s1908_s30  ;;  %1349 = vmatprep.subr.bf16.mxu1 %v903_v26 }
 0x186   :  { %357 = vrot.lane.b32.xlu0 %v2217_v23, %s1908_s30 }
 0x187   :  { %v799_v30 = vpop.permute.xlu1 %798  ;;  %v598_v27 = vpop.permute.xlu0 %597 }
 0x188   :  { %v902_v5 = vsel %vm693_vm9, %v799_v30, %v801_v17  ;;  %v702_v10 = vsel %vm693_vm9, %v598_v27, %v600_v29  ;;  %v337_v17 = vsel %vm332_vm10, %v2480_v16, %v2475_v59  ;;  %v538_v30 = vsel %vm332_vm10, %v2499_v6, %v2497_v63 }
 0x189   :  { %557 = vrot.lane.b32.xlu1 %v2225_v24, %s1908_s30  ;;  %1350 = vmatpush1.bf16.msra.mxu1 %v902_v5  ;;  %v537_v27 = vsel %vm332_vm10, %v2487_v9, %v2499_v6  ;;  %v340_v6 = vsel %vm332_vm10, %v2519_v20, %v2531_v25  ;;  %v539_v25 = vsel %vm332_vm10, %v2529_v14, %v2539_v19 }
 0x18a   :  { %555 = vrot.lane.b32.xlu0 %v2097_v15, %s1908_s30  ;;  %1164 = vmatpush1.bf16.msra.mxu0 %v702_v10  ;;  %v333_v15 = vsel %vm332_vm10, %v2416_v33, %v2411_v45 }
 0x18b   :  { %v608_v18 = vpop.permute.xlu1 %607  ;;  %v606_v22 = vpop.permute.xlu0 %605 }
 0x18c   :  { %v705_v23 = vsel %vm693_vm9, %v606_v22, %v608_v18 }
 0x18d   :  { %840 = vrot.lane.b32.xlu1 %v2403_v39, %s1907_s27  ;;  %1165 = vmatprep.subr.bf16.mxu0 %v705_v23  ;;  %v339_v23 = vsel %vm332_vm10, %v2521_v38, %v2519_v20 }
 0x18e   :  { %639 = vrot.lane.b32.xlu0 %v2393_v32, %s1907_s27 }
 0x18f   :  { %v809_v24 = vpop.permute.xlu1 %808  ;;  %v807_v42 = vpop.permute.xlu0 %806 }
 0x190   :  { %v905_v39 = vsel %vm693_vm9, %v807_v42, %v809_v24 }
 0x191   :  { %649 = vrot.lane.b32.xlu1 %v334_v1, %s1907_s27  ;;  %1351 = vmatprep.subr.bf16.mxu1 %v905_v39  ;;  %v540_v1 = vsel %vm332_vm10, %v2539_v19, %v2537_v47 }
 0x192   :  { %647 = vrot.lane.b32.xlu0 %v333_v15, %s1907_s27  ;;  %v1748_v15 = vld [vmem:[#allocation8 + $0x4] ss:$12 sps:$4 sm:$0xff]  }
 0x193   :  { %v805_v60 = vpop.permute.xlu1 %804  ;;  %v604_v32 = vpop.permute.xlu0 %603  ;;  %1187 = vmatprep.mubr.bf16.mxu0 %v1748_v15  ;;  %1373 = vmatprep.mubr.bf16.mxu1 %v1748_v15 }
 0x194   :  { %v904_v55 = vsel %vm693_vm9, %v805_v60, %v807_v42  ;;  %v704_v45 = vsel %vm693_vm9, %v604_v32, %v606_v22 }
 0x195   :  { %850 = vrot.lane.b32.xlu1 %v534_v44, %s1907_s27  ;;  %1352 = vmatpush1.bf16.msra.mxu1 %v904_v55 }
 0x196   :  { %848 = vrot.lane.b32.xlu0 %v533_v46, %s1907_s27  ;;  %1166 = vmatpush1.bf16.msra.mxu0 %v704_v45 }
 0x197   :  { %v614_v56 = vpop.permute.xlu1 %613  ;;  %v612_v61 = vpop.permute.xlu0 %611 }
 0x198   :  { %v707_v58 = vsel %vm693_vm9, %v612_v61, %v614_v56 }
 0x199   :  { %361 = vrot.lane.b32.xlu1 %v2121_v37, %s1908_s30  ;;  %1167 = vmatprep.subr.bf16.mxu0 %v707_v58 }
 0x19a   :  { %359 = vrot.lane.b32.xlu0 %v2125_v40, %s1908_s30 }
 0x19b   :  { %v815_v11 = vpop.permute.xlu1 %814  ;;  %v813_v28 = vpop.permute.xlu0 %812 }
 0x19c   :  { %v907_v7 = vsel %vm693_vm9, %v813_v28, %v815_v11 }
 0x19d   :  { %559 = vrot.lane.b32.xlu1 %v2137_v50, %s1908_s30  ;;  %1353 = vmatprep.subr.bf16.mxu1 %v907_v7 }
 0x19e   :  { %363 = vrot.lane.b32.xlu0 %v2259_v51, %s1908_s30 }
 0x19f   :  { %v811_v12 = vpop.permute.xlu1 %810  ;;  %v610_v52 = vpop.permute.xlu0 %609 }
 0x1a0   :  { %v906_v37 = vsel %vm693_vm9, %v811_v12, %v813_v28  ;;  %v706_v40 = vsel %vm693_vm9, %v610_v52, %v612_v61 }
 0x1a1   :  { %563 = vrot.lane.b32.xlu1 %v2269_v54, %s1908_s30  ;;  %1354 = vmatpush1.bf16.msra.mxu1 %v906_v37  ;;  %v336_v54 = vsel %vm332_vm10, %v2443_v31, %v2457_v0 }
 0x1a2   :  { %561 = vrot.lane.b32.xlu0 %v2133_v48, %s1908_s30  ;;  %1168 = vmatpush1.bf16.msra.mxu0 %v706_v40  ;;  %v335_v48 = vsel %vm332_vm10, %v2448_v49, %v2443_v31 }
 0x1a3   :  { %v620_v50 = vpop.permute.xlu1 %619  ;;  %v618_v3 = vpop.permute.xlu0 %617 }
 0x1a4   :  { %v709_v51 = vsel %vm693_vm9, %v618_v3, %v620_v50 }
 0x1a5   :  { %846 = vrot.lane.b32.xlu1 %v2423_v8, %s1907_s27  ;;  %1169 = vmatprep.subr.bf16.mxu0 %v709_v51 }
 0x1a6   :  { %645 = vrot.lane.b32.xlu0 %v2416_v33, %s1907_s27 }
 0x1a7   :  { %v821_v43 = vpop.permute.xlu1 %820  ;;  %v819_v34 = vpop.permute.xlu0 %818 }
 0x1a8   :  { %v909_v8 = vsel %vm693_vm9, %v819_v34, %v821_v43 }
 0x1a9   :  { %655 = vrot.lane.b32.xlu1 %v336_v54, %s1907_s27  ;;  %1355 = vmatprep.subr.bf16.mxu1 %v909_v8 }
 0x1aa   :  { %653 = vrot.lane.b32.xlu0 %v335_v48, %s1907_s27 }
 0x1ab   :  { %v817_v13 = vpop.permute.xlu1 %816  ;;  %v616_v33 = vpop.permute.xlu0 %615 }
 0x1ac   :  { %v908_v0 = vsel %vm693_vm9, %v817_v13, %v819_v34  ;;  %v708_v31 = vsel %vm693_vm9, %v616_v33, %v618_v3 }
 0x1ad   :  { %856 = vrot.lane.b32.xlu1 %v536_v53, %s1907_s27  ;;  %1356 = vmatpush1.bf16.msra.mxu1 %v908_v0 }
 0x1ae   :  { %854 = vrot.lane.b32.xlu0 %v535_v21, %s1907_s27  ;;  %1170 = vmatpush1.bf16.msra.mxu0 %v708_v31 }
 0x1af   :  { %v626_v35 = vpop.permute.xlu1 %625  ;;  %v624_v29 = vpop.permute.xlu0 %623 }
 0x1b0   :  { %v711_v36 = vsel %vm693_vm9, %v624_v29, %v626_v35 }
 0x1b1   :  { %852 = vrot.lane.b32.xlu1 %v2455_v57, %s1907_s27  ;;  %1171 = vmatprep.subr.bf16.mxu0 %v711_v36 }
 0x1b2   :  { %651 = vrot.lane.b32.xlu0 %v2448_v49, %s1907_s27 }
 0x1b3   :  { %v827_v4 = vpop.permute.xlu1 %826  ;;  %v825_v41 = vpop.permute.xlu0 %824 }
 0x1b4   :  { %v911_v57 = vsel %vm693_vm9, %v825_v41, %v827_v4 }
 0x1b5   :  { %661 = vrot.lane.b32.xlu1 %v338_v62, %s1907_s27  ;;  %1357 = vmatprep.subr.bf16.mxu1 %v911_v57 }
 0x1b6   :  { %659 = vrot.lane.b32.xlu0 %v337_v17, %s1907_s27 }
 0x1b7   :  { %v823_v26 = vpop.permute.xlu1 %822  ;;  %v622_v49 = vpop.permute.xlu0 %621 }
 0x1b8   :  { %v910_v2 = vsel %vm693_vm9, %v823_v26, %v825_v41  ;;  %v710_v59 = vsel %vm693_vm9, %v622_v49, %v624_v29 }
 0x1b9   :  { %862 = vrot.lane.b32.xlu1 %v538_v30, %s1907_s27  ;;  %1358 = vmatpush1.bf16.msra.mxu1 %v910_v2 }
 0x1ba   :  { %860 = vrot.lane.b32.xlu0 %v537_v27, %s1907_s27  ;;  %1172 = vmatpush1.bf16.msra.mxu0 %v710_v59 }
 0x1bb   :  { %v632_v5 = vpop.permute.xlu1 %631  ;;  %v630_v10 = vpop.permute.xlu0 %629 }
 0x1bc   :  { %v713_v63 = vsel %vm693_vm9, %v630_v10, %v632_v5 }
 0x1bd   :  { %858 = vrot.lane.b32.xlu1 %v2487_v9, %s1907_s27  ;;  %1173 = vmatprep.subr.bf16.mxu0 %v713_v63 }
 0x1be   :  { %657 = vrot.lane.b32.xlu0 %v2480_v16, %s1907_s27 }
 0x1bf   :  { %v833_v18 = vpop.permute.xlu1 %832  ;;  %v831_v22 = vpop.permute.xlu0 %830 }
 0x1c0   :  { %v913_v9 = vsel %vm693_vm9, %v831_v22, %v833_v18 }
 0x1c1   :  { %667 = vrot.lane.b32.xlu1 %v340_v6, %s1907_s27  ;;  %1359 = vmatprep.subr.bf16.mxu1 %v913_v9 }
 0x1c2   :  { %665 = vrot.lane.b32.xlu0 %v339_v23, %s1907_s27 }
 0x1c3   :  { %v344_v24 = vpop.permute.xlu1 %343  ;;  %v342_v16 = vpop.permute.xlu0 %341 }
 0x1c4   :  { %v366_v19 = vsel %vm365_vm11, %v342_v16, %v344_v24 }
 0x1c5   :  { %868 = vrot.lane.b32.xlu1 %v540_v1, %s1907_s27 }
 0x1c6   :  { %866 = vrot.lane.b32.xlu0 %v539_v25, %s1907_s27 }
 0x1c7   :  { %v542_v20 = vpop.permute.xlu1 %541  ;;  %v346_v42 = vpop.permute.xlu0 %345 }
 0x1c8   :  { %v367_v39 = vsel %vm365_vm11, %v344_v24, %v346_v42 }
 0x1c9   :  { %864 = vrot.lane.b32.xlu1 %v2529_v14, %s1907_s27 }
 0x1ca   :  { %663 = vrot.lane.b32.xlu0 %v2521_v38, %s1907_s27 }
 0x1cb   :  { %v546_v47 = vpop.permute.xlu1 %545 }
 0x1cc   :  { %v544_v60 = vpop.permute.xlu0 %543 }
 0x1cd   :  { %673 = vrot.lane.b32.xlu1 %v367_v39, %s1907_s27  ;;  %v566_v44 = vsel %vm365_vm11, %v544_v60, %v546_v47  ;;  %v565_v38 = vsel %vm365_vm11, %v542_v20, %v544_v60 }
 0x1ce   :  { %671 = vrot.lane.b32.xlu0 %v366_v19, %s1907_s27 }
 0x1cf   :  { %v829_v32 = vpop.permute.xlu1 %828 }
 0x1d0   :  { %v628_v14 = vpop.permute.xlu0 %627  ;;  %v912_v55 = vsel %vm693_vm9, %v829_v32, %v831_v22 }
 0x1d1   :  { %1360 = vmatpush1.bf16.msra.mxu1 %v912_v55  ;;  %874 = vrot.lane.b32.xlu1 %v566_v44, %s1907_s27  ;;  %v712_v46 = vsel %vm693_vm9, %v628_v14, %v630_v10 }
 0x1d2   :  { %872 = vrot.lane.b32.xlu0 %v565_v38, %s1907_s27  ;;  %1174 = vmatpush1.bf16.msra.mxu0 %v712_v46 }
 0x1d3   :  { %v638_v45 = vpop.permute.xlu1 %637 }
 0x1d4   :  { %v636_v56 = vpop.permute.xlu0 %635 }
 0x1d5   :  { %870 = vrot.lane.b32.xlu1 %v542_v20, %s1907_s27  ;;  %v715_v61 = vsel %vm693_vm9, %v636_v56, %v638_v45 }
 0x1d6   :  { %669 = vrot.lane.b32.xlu0 %v342_v16, %s1907_s27  ;;  %1175 = vmatprep.subr.bf16.mxu0 %v715_v61 }
 0x1d7   :  { %v839_v58 = vpop.permute.xlu1 %838 }
 0x1d8   :  { %v837_v11 = vpop.permute.xlu0 %836 }
 0x1d9   :  { %v915_v28 = vsel %vm693_vm9, %v837_v11, %v839_v58 }
 0x1da   :  { %1361 = vmatprep.subr.bf16.mxu1 %v915_v28 }
 0x1db   :  { %v350_v7 = vpop.permute.xlu1 %349 }
 0x1dc   :  { %v348_v12 = vpop.permute.xlu0 %347 }
 0x1dd   :  { %v368_v52 = vsel %vm365_vm11, %v348_v12, %v350_v7 }
 0x1de   :  { %677 = vrot.lane.b32.xlu0 %v368_v52, %s1907_s27 }
 0x1df   :  { %v548_v37 = vpop.permute.xlu1 %547 }
 0x1e0   :  { %v352_v40 = vpop.permute.xlu0 %351 }
 0x1e1   :  { %v369_v50 = vsel %vm365_vm11, %v350_v7, %v352_v40 }
 0x1e2   :  { %679 = vrot.lane.b32.xlu1 %v369_v50, %s1907_s27 }
 0x1e3   :  { %v552_v3 = vpop.permute.xlu1 %551 }
 0x1e4   :  { %v550_v51 = vpop.permute.xlu0 %549 }
 0x1e5   :  { %v567_v43 = vsel %vm365_vm11, %v548_v37, %v550_v51  ;;  %v568_v54 = vsel %vm365_vm11, %v550_v51, %v552_v3 }
 0x1e6   :  { %880 = vrot.lane.b32.xlu1 %v568_v54, %s1907_s27  ;;  %878 = vrot.lane.b32.xlu0 %v567_v43, %s1907_s27 }
 0x1e7   :  { %v835_v34 = vpop.permute.xlu1 %834 }
 0x1e8   :  { %v634_v48 = vpop.permute.xlu0 %633  ;;  %v914_v8 = vsel %vm693_vm9, %v835_v34, %v837_v11 }
 0x1e9   :  { %1362 = vmatpush1.bf16.msra.mxu1 %v914_v8  ;;  %v714_v13 = vsel %vm693_vm9, %v634_v48, %v636_v56 }
 0x1ea   :  { %876 = vrot.lane.b32.xlu1 %v548_v37, %s1907_s27  ;;  %675 = vrot.lane.b32.xlu0 %v348_v12, %s1907_s27 }
 0x1eb   :  { %1176 = vmatpush1.bf16.msra.mxu0 %v714_v13  ;;  %v644_v33 = vpop.permute.xlu1 %643 }
 0x1ec   :  { %v642_v53 = vpop.permute.xlu0 %641 }
 0x1ed   :  { %v717_v0 = vsel %vm693_vm9, %v642_v53, %v644_v33 }
 0x1ee   :  { %1177 = vmatprep.subr.bf16.mxu0 %v717_v0  ;;  %v974_v0 = vld [vmem:[%s2898_s4] sm:$0xff] }
 0x1ef   :  { %v845_v21 = vpop.permute.xlu1 %844 }
 0x1f0   :  { %v843_v31 = vpop.permute.xlu0 %842 }
 0x1f1   :  { %v917_v35 = vsel %vm693_vm9, %v843_v31, %v845_v21  ;;  %v975_v21 = vld [vmem:[%s2898_s4 + $0x8] sm:$0xff] }
 0x1f2   :  { %1363 = vmatprep.subr.bf16.mxu1 %v917_v35  ;;  %v977_v35 = vld [vmem:[%s2898_s4 + $0x18] sm:$0xff] }
 0x1f3   :  { %v356_v29 = vpop.permute.xlu1 %355 }
 0x1f4   :  { %v354_v36 = vpop.permute.xlu0 %353 }
 0x1f5   :  { %v370_v4 = vsel %vm365_vm11, %v354_v36, %v356_v29 }
 0x1f6   :  { %683 = vrot.lane.b32.xlu0 %v370_v4, %s1907_s27  ;;  %v1746_v4 = vld [vmem:[#allocation8] ss:$12 sps:$4 sm:$0xff]  }
 0x1f7   :  { %v554_v62 = vpop.permute.xlu1 %553 }
 0x1f8   :  { %v358_v41 = vpop.permute.xlu0 %357 }
 0x1f9   :  { %v371_v17 = vsel %vm365_vm11, %v356_v29, %v358_v41 }
 0x1fa   :  { %685 = vrot.lane.b32.xlu1 %v371_v17, %s1907_s27  ;;  %v1749_v17 = vld [vmem:[#allocation8 + $0x1c] ss:$12 sps:$4 sm:$0xff]  }
 0x1fb   :  { %v558_v57 = vpop.permute.xlu1 %557 }
 0x1fc   :  { %v556_v26 = vpop.permute.xlu0 %555 }
 0x1fd   :  { %v569_v49 = vsel %vm365_vm11, %v554_v62, %v556_v26  ;;  %v570_v30 = vsel %vm365_vm11, %v556_v26, %v558_v57 }
 0x1fe   :  { %886 = vrot.lane.b32.xlu1 %v570_v30, %s1907_s27  ;;  %884 = vrot.lane.b32.xlu0 %v569_v49, %s1907_s27  ;;  %v978_v49 = vld [vmem:[%s2898_s4 + $0x20] sm:$0xff]  ;;  %v979_v30 = vld [vmem:[%s2898_s4 + $0x28] sm:$0xff] }
 0x1ff   :  { %v841_v2 = vpop.permute.xlu1 %840 }
 0x200   :  { %v640_v27 = vpop.permute.xlu0 %639  ;;  %v916_v59 = vsel %vm693_vm9, %v841_v2, %v843_v31 }
 0x201   :  { %1364 = vmatpush1.bf16.msra.mxu1 %v916_v59  ;;  %v716_v5 = vsel %vm693_vm9, %v640_v27, %v642_v53 }
 0x202   :  { %882 = vrot.lane.b32.xlu1 %v554_v62, %s1907_s27  ;;  %681 = vrot.lane.b32.xlu0 %v354_v36, %s1907_s27  ;;  %v976_v62 = vld [vmem:[%s2898_s4 + $0x10] sm:$0xff] }
 0x203   :  { %1178 = vmatpush1.bf16.msra.mxu0 %v716_v5  ;;  %v650_v10 = vpop.permute.xlu1 %649  ;;  %v1751_v5 = vld [vmem:[#allocation8 + $0x18] ss:$12 sps:$4 sm:$0xff]  }
 0x204   :  { %v648_v63 = vpop.permute.xlu0 %647 }
 0x205   :  { %v719_v18 = vsel %vm693_vm9, %v648_v63, %v650_v10  ;;  %v980_v10 = vld [vmem:[%s2898_s4 + $0x30] sm:$0xff] }
 0x206   :  { %1179 = vmatprep.subr.bf16.mxu0 %v719_v18 }
 0x207   :  { %v851_v6 = vpop.permute.xlu1 %850 }
 0x208   :  { %v849_v22 = vpop.permute.xlu0 %848 }
 0x209   :  { %v919_v23 = vsel %vm693_vm9, %v849_v22, %v851_v6  ;;  %v1752_v6 = vld [vmem:[#allocation8 + $0x34] ss:$12 sps:$4 sm:$0xff]  }
 0x20a   :  { %1365 = vmatprep.subr.bf16.mxu1 %v919_v23 }
 0x20b   :  { %v362_v9 = vpop.permute.xlu1 %361 }
 0x20c   :  { %v360_v24 = vpop.permute.xlu0 %359 }
 0x20d   :  { %v372_v16 = vsel %vm365_vm11, %v360_v24, %v362_v9 }
 0x20e   :  { %689 = vrot.lane.b32.xlu0 %v372_v16, %s1907_s27 }
 0x20f   :  { %v560_v1 = vpop.permute.xlu1 %559 }
 0x210   :  { %v364_v25 = vpop.permute.xlu0 %363 }
 0x211   :  { %v373_v20 = vsel %vm365_vm11, %v362_v9, %v364_v25  ;;  %v1754_v25 = vld [vmem:[#allocation8 + $0x30] ss:$12 sps:$4 sm:$0xff]  }
 0x212   :  { %691 = vrot.lane.b32.xlu1 %v373_v20, %s1907_s27  ;;  %v984_v20 = vld [vmem:[%s2898_s4 + $0x50] sm:$0xff] }
 0x213   :  { %v564_v42 = vpop.permute.xlu1 %563 }
 0x214   :  { %v562_v15 = vpop.permute.xlu0 %561 }
 0x215   :  { %v571_v47 = vsel %vm365_vm11, %v560_v1, %v562_v15  ;;  %v572_v39 = vsel %vm365_vm11, %v562_v15, %v564_v42  ;;  %v1755_v42 = vld [vmem:[#allocation8 + $0x4c] ss:$12 sps:$4 sm:$0xff]  }
 0x216   :  { %892 = vrot.lane.b32.xlu1 %v572_v39, %s1907_s27  ;;  %890 = vrot.lane.b32.xlu0 %v571_v47, %s1907_s27  ;;  %v985_v15 = vld [vmem:[%s2898_s4 + $0x58] sm:$0xff] }
 0x217   :  { %v847_v60 = vpop.permute.xlu1 %846 }
 0x218   :  { %v646_v19 = vpop.permute.xlu0 %645  ;;  %v918_v32 = vsel %vm693_vm9, %v847_v60, %v849_v22  ;;  %v1757_v60 = vld [vmem:[#allocation8 + $0x48] ss:$12 sps:$4 sm:$0xff]  }
 0x219   :  { %1366 = vmatpush1.bf16.msra.mxu1 %v918_v32  ;;  %v718_v44 = vsel %vm693_vm9, %v646_v19, %v648_v63  ;;  %v981_v63 = vld [vmem:[%s2898_s4 + $0x38] sm:$0xff]  ;;  %v1758_v32 = vld [vmem:[#allocation8 + $0x64] ss:$12 sps:$4 sm:$0xff]  }
 0x21a   :  { %888 = vrot.lane.b32.xlu1 %v560_v1, %s1907_s27  ;;  %687 = vrot.lane.b32.xlu0 %v360_v24, %s1907_s27  ;;  %v982_v24 = vld [vmem:[%s2898_s4 + $0x40] sm:$0xff]  ;;  %v983_v1 = vld [vmem:[%s2898_s4 + $0x48] sm:$0xff]  ;;  %s1909_s4 = smov [#allocation10]  }
 0x21b   :  { %1180 = vmatpush1.bf16.msra.mxu0 %v718_v44  ;;  %v656_v14 = vpop.permute.xlu1 %655  ;;  %s1581_s26 = sshll.u32 %s1909_s4, 4  ;;  %s1582_s26 = int_to_ptr.vmem [resolvable:$true] %s1581_s26 }
 0x21c   :  { %v654_v55 = vpop.permute.xlu0 %653  ;;  %s1861_s27 = scalar_lea.vmem %s1582_s26, 6144  ;;  %p1866_p11 = scmp.lt.s32.totalorder %s1582_s26, %s1582_s26 }
 0x21d   :  { %v721_v38 = vsel %vm693_vm9, %v654_v55, %v656_v14  ;;  %p1862_p10 = scmp.ne.s32.totalorder %s1582_s26, %s1861_s27  ;;  %p1867_p12 = scmp.lt.s32.totalorder %s1861_s27, %s1861_s27 }
 0x21e   :  { %1181 = vmatprep.subr.bf16.mxu0 %v721_v38  ;;  %988 = vperm.xlu0 %1744, %v974_v0  }
 0x21f   :  { %v857_v46 = vpop.permute.xlu1 %856  ;;  %993 = vperm.xlu1 %1745, %v975_v21   ;;  %p1868_p13 = por %p1867_p12, %p1866_p11 }
 0x220   :  { %v855_v45 = vpop.permute.xlu0 %854 }
 0x221   :  { %v921_v56 = vsel %vm693_vm9, %v855_v45, %v857_v46  ;;  %p1869_p0 = pnand %p1868_p13, %p1862_p10 }
 0x222   :  { %1367 = vmatprep.subr.bf16.mxu1 %v921_v56  ;;  %1003 = vperm.xlu0 %1744, %v977_v35  }
 0x223   :  { %v853_v61 = vpop.permute.xlu1 %852  ;;  %998 = vperm.xlu1 %1745, %v976_v62   ;;  %v1767_v62 = vld [vmem:[#allocation8 + $0x50] ss:$12 sps:$4 sm:$0xff]  }
 0x224   :  { %v652_v58 = vpop.permute.xlu0 %651  ;;  %v920_v11 = vsel %vm693_vm9, %v853_v61, %v855_v45  ;;  %v1760_v45 = vld [vmem:[#allocation8 + $0x60] ss:$12 sps:$4 sm:$0xff]  }
 0x225   :  { %v720_v28 = vsel %vm693_vm9, %v652_v58, %v654_v55  ;;  %1368 = vmatpush1.bf16.msra.mxu1 %v920_v11  ;;  %v1761_v58 = vld [vmem:[#allocation8 + $0x7c] ss:$12 sps:$4 sm:$0xff]   ;;  %v1763_v11 = vld [vmem:[#allocation8 + $0x78] ss:$12 sps:$4 sm:$0xff]  }
 0x226   :  { %1182 = vmatpush1.bf16.msra.mxu0 %v720_v28  ;;  %1013 = vperm.xlu0 %1744, %v979_v30   ;;  %v2902_v28 = vmov 0  }
 0x227   :  { %v662_v7 = vpop.permute.xlu1 %661  ;;  %1008 = vperm.xlu1 %1745, %v978_v49  }
 0x228   :  { %v660_v12 = vpop.permute.xlu0 %659 }
 0x229   :  { %v723_v52 = vsel %vm693_vm9, %v660_v12, %v662_v7 }
 0x22a   :  { %1183 = vmatprep.subr.bf16.mxu0 %v723_v52  ;;  %1023 = vperm.xlu0 %1744, %v981_v63  }
 0x22b   :  { %v863_v37 = vpop.permute.xlu1 %862  ;;  %1018 = vperm.xlu1 %1745, %v980_v10  }
 0x22c   :  { %v861_v40 = vpop.permute.xlu0 %860 }
 0x22d   :  { %v923_v50 = vsel %vm693_vm9, %v861_v40, %v863_v37 }
 0x22e   :  { %1369 = vmatprep.subr.bf16.mxu1 %v923_v50  ;;  %1033 = vperm.xlu0 %1744, %v983_v1  }
 0x22f   :  { %v859_v3 = vpop.permute.xlu1 %858  ;;  %1028 = vperm.xlu1 %1745, %v982_v24  }
 0x230   :  { %v658_v51 = vpop.permute.xlu0 %657  ;;  %v922_v43 = vsel %vm693_vm9, %v859_v3, %v861_v40 }
 0x231   :  { %v722_v54 = vsel %vm693_vm9, %v658_v51, %v660_v12  ;;  %1370 = vmatpush1.bf16.msra.mxu1 %v922_v43 }
 0x232   :  { %1184 = vmatpush1.bf16.msra.mxu0 %v722_v54  ;;  %1043 = vperm.xlu0 %1744, %v985_v15  }
 0x233   :  { %v668_v34 = vpop.permute.xlu1 %667  ;;  %1038 = vperm.xlu1 %1745, %v984_v20  }
 0x234   :  { %v666_v48 = vpop.permute.xlu0 %665 }
 0x235   :  { %v725_v8 = vsel %vm693_vm9, %v666_v48, %v668_v34 }
 0x236   :  { %1185 = vmatprep.subr.bf16.mxu0 %v725_v8 }
 0x237   :  { %v869_v13 = vpop.permute.xlu1 %868 }
 0x238   :  { %v867_v33 = vpop.permute.xlu0 %866 }
 0x239   :  { %v925_v53 = vsel %vm693_vm9, %v867_v33, %v869_v13 }
 0x23a   :  { %1371 = vmatprep.subr.bf16.mxu1 %v925_v53 }
 0x23b   :  { %v865_v31 = vpop.permute.xlu1 %864 }
 0x23c   :  { %v664_v29 = vpop.permute.xlu0 %663  ;;  %v924_v36 = vsel %vm693_vm9, %v865_v31, %v867_v33 }
 0x23d   :  { %v724_v41 = vsel %vm693_vm9, %v664_v29, %v666_v48  ;;  %1372 = vmatpush1.bf16.msra.mxu1 %v924_v36  ;;  %v1764_v29 = vld [vmem:[#allocation8 + $0x8] ss:$12 sps:$4 sm:$0xff]   ;;  %v1765_v36 = vld [vmem:[#allocation8 + $0x20] ss:$12 sps:$4 sm:$0xff]  }
 0x23e   :  { %1186 = vmatpush1.bf16.msra.mxu0 %v724_v41  ;;  %v1768_v41 = vld [vmem:[#allocation8 + $0x68] ss:$12 sps:$4 sm:$0xff]  }
 0x23f   :  { %v674_v57 = vpop.permute.xlu1 %673 }
 0x240   :  { %v672_v26 = vpop.permute.xlu0 %671  ;;  %1374 = vmatmul.mubr.bf16.vlgmr.msra.gmra.mrb[0].mxu1 %v1746_v4 }
 0x241   :  { %v727_v2 = vsel %vm693_vm9, %v672_v26, %v674_v57  ;;  %1188 = vmatmul.mubr.bf16.vlgmr.msra.gmra.mrb[0].mxu0 %v1746_v4  ;;  %1383 = vmatprep.mubr.bf16.mxu1 %v1749_v17  ;;  %v1766_v4 = vld [vmem:[#allocation8 + $0x38] ss:$12 sps:$4 sm:$0xff]  }
 0x242   :  { %1248 = vmatprep.subr.bf16.mxu0 %v727_v2  ;;  %1197 = vmatprep.mubr.bf16.mxu0 %v1749_v17  ;;  %v1769_v17 = vld [vmem:[#allocation8 + $0x80] ss:$12 sps:$4 sm:$0xff]  }
 0x243   :  { %v875_v27 = vpop.permute.xlu1 %874 }
 0x244   :  { %v873_v59 = vpop.permute.xlu0 %872 }
 0x245   :  { %v927_v18 = vsel %vm693_vm9, %v873_v59, %v875_v27 }
 0x246   :  { %1434 = vmatprep.subr.bf16.mxu1 %v927_v18 }
 0x247   :  { %v871_v22 = vpop.permute.xlu1 %870 }
 0x248   :  { %v926_v23 = vsel %vm693_vm9, %v871_v22, %v873_v59  ;;  %v670_v9 = vpop.permute.xlu0 %669  ;;  %1384 = vmatmul.mubr.bf16.gmra.mrb[4].mxu1 %v1751_v5 }
 0x249   :  { %v726_v16 = vsel %vm693_vm9, %v670_v9, %v672_v26  ;;  %1435 = vmatpush1.bf16.msra.mxu1 %v926_v23  ;;  %1198 = vmatmul.mubr.bf16.gmra.mrb[4].mxu0 %v1751_v5 }
 0x24a   :  { %1249 = vmatpush1.bf16.msra.mxu0 %v726_v16  ;;  %1207 = vmatprep.mubr.bf16.mxu0 %v1752_v6 }
 0x24b   :  { %1393 = vmatprep.mubr.bf16.mxu1 %v1752_v6 }
 0x250   :  { %1394 = vmatmul.mubr.bf16.gmra.mrb[8].mxu1 %v1754_v25  ;;  %v678_v47 = vpop.permute.xlu0 %677 }
 0x251   :  { %1208 = vmatmul.mubr.bf16.gmra.mrb[8].mxu0 %v1754_v25  ;;  %1403 = vmatprep.mubr.bf16.mxu1 %v1755_v42 }
 0x252   :  { %1217 = vmatprep.mubr.bf16.mxu0 %v1755_v42 }
 0x254   :  { %v680_v39 = vpop.permute.xlu1 %679 }
 0x255   :  { %v729_v19 = vsel %vm693_vm9, %v678_v47, %v680_v39 }
 0x256   :  { %1250 = vmatprep.subr.bf16.mxu0 %v729_v19 }
 0x258   :  { %v881_v44 = vpop.permute.xlu1 %880  ;;  %v879_v14 = vpop.permute.xlu0 %878  ;;  %1404 = vmatmul.mubr.bf16.gmra.mrb[12].mxu1 %v1757_v60 }
 0x259   :  { %v929_v55 = vsel %vm693_vm9, %v879_v14, %v881_v44  ;;  %1218 = vmatmul.mubr.bf16.gmra.mrb[12].mxu0 %v1757_v60  ;;  %1413 = vmatprep.mubr.bf16.mxu1 %v1758_v32 }
 0x25a   :  { %1436 = vmatprep.subr.bf16.mxu1 %v929_v55  ;;  %1227 = vmatprep.mubr.bf16.mxu0 %v1758_v32 }
 0x25c   :  { %v877_v38 = vpop.permute.xlu1 %876  ;;  %v676_v46 = vpop.permute.xlu0 %675 }
 0x25d   :  { %v928_v56 = vsel %vm693_vm9, %v877_v38, %v879_v14  ;;  %v728_v61 = vsel %vm693_vm9, %v676_v46, %v678_v47 }
 0x25e   :  { %1251 = vmatpush1.bf16.msra.mxu0 %v728_v61  ;;  %1437 = vmatpush1.bf16.msra.mxu1 %v928_v56 }
 0x260   :  { %1414 = vmatmul.mubr.bf16.gmra.mrb[16].mxu1 %v1760_v45 }
 0x261   :  { %1228 = vmatmul.mubr.bf16.gmra.mrb[16].mxu0 %v1760_v45  ;;  %1423 = vmatprep.mubr.bf16.mxu1 %v1761_v58 }
 0x262   :  { %1237 = vmatprep.mubr.bf16.mxu0 %v1761_v58 }
 0x268   :  { %1424 = vmatmul.mubr.bf16.gmra.mrb[20].mxu1 %v1763_v11  ;;  %v684_v7 = vpop.permute.xlu0 %683 }
 0x269   :  { %1238 = vmatmul.mubr.bf16.gmra.mrb[20].mxu0 %v1763_v11  ;;  %1466 = vmatprep.mubr.bf16.mxu1 %v2902_v28 }
 0x26a   :  { %1280 = vmatprep.mubr.bf16.mxu0 %v2902_v28 }
 0x26c   :  { %v686_v12 = vpop.permute.xlu1 %685 }
 0x26d   :  { %v731_v52 = vsel %vm693_vm9, %v684_v7, %v686_v12 }
 0x26e   :  { %1252 = vmatprep.subr.bf16.mxu0 %v731_v52 }
 0x270   :  { %v887_v37 = vpop.permute.xlu1 %886  ;;  %v885_v40 = vpop.permute.xlu0 %884 }
 0x271   :  { %v931_v50 = vsel %vm693_vm9, %v885_v40, %v887_v37 }
 0x272   :  { %1438 = vmatprep.subr.bf16.mxu1 %v931_v50 }
 0x274   :  { %v883_v3 = vpop.permute.xlu1 %882  ;;  %v682_v51 = vpop.permute.xlu0 %681 }
 0x275   :  { %v930_v43 = vsel %vm693_vm9, %v883_v3, %v885_v40  ;;  %v730_v54 = vsel %vm693_vm9, %v682_v51, %v684_v7 }
 0x276   :  { %1253 = vmatpush1.bf16.msra.mxu0 %v730_v54  ;;  %1439 = vmatpush1.bf16.msra.mxu1 %v930_v43 }
 0x280   :  { %v690_v34 = vpop.permute.xlu0 %689 }
 0x284   :  { %v692_v48 = vpop.permute.xlu1 %691 }
 0x285   :  { %v733_v8 = vsel %vm693_vm9, %v690_v34, %v692_v48 }
 0x286   :  { %1254 = vmatprep.subr.bf16.mxu0 %v733_v8 }
 0x288   :  { %v893_v13 = vpop.permute.xlu1 %892  ;;  %v891_v33 = vpop.permute.xlu0 %890 }
 0x289   :  { %v933_v53 = vsel %vm693_vm9, %v891_v33, %v893_v13 }
 0x28a   :  { %1440 = vmatprep.subr.bf16.mxu1 %v933_v53 }
 0x28c   :  { %v889_v0 = vpop.permute.xlu1 %888  ;;  %v688_v21 = vpop.permute.xlu0 %687 }
 0x28d   :  { %v932_v31 = vsel %vm693_vm9, %v889_v0, %v891_v33  ;;  %v732_v35 = vsel %vm693_vm9, %v688_v21, %v690_v34 }
 0x28e   :  { %1255 = vmatpush1.bf16.msra.mxu0 %v732_v35  ;;  %1441 = vmatpush1.bf16.msra.mxu1 %v932_v31 }
 0x291   :  { %1617 = vmatmul.mubr.msk.bf16.vlgmr.msra.gmra.mrb[0].mxu0 %vm1136_vm12, %v1764_v29  ;;  %1623 = vmatmul.mubr.msk.bf16.vlgmr.msra.gmra.mrb[0].mxu1 %vm1136_vm12, %v1764_v29 }
 0x292   :  { %1290 = vmatprep.mubr.bf16.mxu0 %v2902_v28  ;;  %1476 = vmatprep.mubr.bf16.mxu1 %v2902_v28 }
 0x299   :  { %1618 = vmatmul.mubr.msk.bf16.gmra.mrb[4].mxu0 %vm1136_vm12, %v1765_v36  ;;  %1624 = vmatmul.mubr.msk.bf16.gmra.mrb[4].mxu1 %vm1136_vm12, %v1765_v36 }
 0x29a   :  { %1300 = vmatprep.mubr.bf16.mxu0 %v2902_v28  ;;  %1486 = vmatprep.mubr.bf16.mxu1 %v2902_v28 }
 0x29d   :  { %v989_v57 = vpop.permute.xlu0 %988 }
 0x29e   :  { %v994_v26 = vpop.permute.xlu1 %993 }
 0x2a1   :  { %1619 = vmatmul.mubr.msk.bf16.gmra.mrb[8].mxu0 %vm1136_vm12, %v1766_v4  ;;  %1625 = vmatmul.mubr.msk.bf16.gmra.mrb[8].mxu1 %vm1136_vm12, %v1766_v4  ;;  %v1004_v20 = vpop.permute.xlu0 %1003 }
 0x2a2   :  { %1310 = vmatprep.mubr.bf16.mxu0 %v2902_v28  ;;  %1496 = vmatprep.mubr.bf16.mxu1 %v2902_v28  ;;  %v999_v25 = vpop.permute.xlu1 %998 }
 0x2a6   :  { %v1009_v11 = vpop.permute.xlu1 %1008 }
 0x2a9   :  { %1620 = vmatmul.mubr.msk.bf16.gmra.mrb[12].mxu0 %vm1136_vm12, %v1767_v62  ;;  %1626 = vmatmul.mubr.msk.bf16.gmra.mrb[12].mxu1 %vm1136_vm12, %v1767_v62 }
 0x2aa   :  { %1320 = vmatprep.mubr.bf16.mxu0 %v2902_v28  ;;  %1506 = vmatprep.mubr.bf16.mxu1 %v2902_v28  ;;  %v1019_v0 = vpop.permute.xlu1 %1018 }
 0x2b1   :  { %1621 = vmatmul.mubr.msk.bf16.gmra.mrb[16].mxu0 %vm1136_vm12, %v1768_v41  ;;  %1627 = vmatmul.mubr.msk.bf16.gmra.mrb[16].mxu1 %vm1136_vm12, %v1768_v41 }
 0x2b2   :  { %1330 = vmatprep.mubr.bf16.mxu0 %v2902_v28  ;;  %1516 = vmatprep.mubr.bf16.mxu1 %v2902_v28  ;;  %v1014_v28 = vpop.permute.xlu0 %1013 }
 0x2b6   :  { %v1024_v21 = vpop.permute.xlu0 %1023 }
 0x2b9   :  { %1622 = vmatmul.mubr.msk.bf16.gmra.mrb[20].mxu0 %vm1136_vm12, %v1769_v17  ;;  %1628 = vmatmul.mubr.msk.bf16.gmra.mrb[20].mxu1 %vm1136_vm12, %v1769_v17 }
 0x364   :  { %v1282_v49 = vpop.f32.mrb[0].mxu0  ;;  %v1468_v30 = vpop.f32.mrb[0].mxu1 }
 0x365   :  { %v1629_v2 = vadd.f32 %v1282_v49, %v989_v57  ;;  %v1653_v27 = vadd.f32 %v1468_v30, %v989_v57  ;;  %v1284_v59 = vpop.f32.mrb[1].mxu0  ;;  %v1470_v5 = vpop.f32.mrb[1].mxu1 }
 0x366   :  { %v1630_v10 = vadd.f32 %v1284_v59, %v989_v57  ;;  %v1654_v63 = vadd.f32 %v1470_v5, %v989_v57  ;;  %v1286_v18 = vpop.f32.mrb[2].mxu0  ;;  %v1472_v6 = vpop.f32.mrb[2].mxu1 }
 0x367   :  { %1527 = vst [vmem:[#allocation10] sm:$0xff] %v1629_v2  ;;  %1552 = vst [vmem:[#allocation10 + $0xc0] sm:$0xff] %v1653_v27  ;;  %v1631_v22 = vadd.f32 %v1286_v18, %v994_v26  ;;  %v1655_v23 = vadd.f32 %v1472_v6, %v994_v26  ;;  %v1288_v9 = vpop.f32.mrb[3].mxu0  ;;  %v1474_v24 = vpop.f32.mrb[3].mxu1 }
 0x368   :  { %1528 = vst [vmem:[#allocation10 + $0x8] sm:$0xff] %v1630_v10  ;;  %1553 = vst [vmem:[#allocation10 + $0xc8] sm:$0xff] %v1654_v63  ;;  %v1632_v16 = vadd.f32 %v1288_v9, %v994_v26  ;;  %v1656_v1 = vadd.f32 %v1474_v24, %v994_v26  ;;  %v1029_v10 = vpop.permute.xlu1 %1028  ;;  %v1034_v63 = vpop.permute.xlu0 %1033 }
 0x369   :  { %1529 = vst [vmem:[#allocation10 + $0x10] sm:$0xff] %v1631_v22  ;;  %1554 = vst [vmem:[#allocation10 + $0xd0] sm:$0xff] %v1655_v23 }
 0x36a   :  { %1530 = vst [vmem:[#allocation10 + $0x18] sm:$0xff] %v1632_v16  ;;  %1555 = vst [vmem:[#allocation10 + $0xd8] sm:$0xff] %v1656_v1 }
 0x36c   :  { %v1292_v42 = vpop.f32.mrb[4].mxu0  ;;  %v1478_v15 = vpop.f32.mrb[4].mxu1 }
 0x36d   :  { %v1633_v47 = vadd.f32 %v1292_v42, %v999_v25  ;;  %v1657_v39 = vadd.f32 %v1478_v15, %v999_v25  ;;  %v1294_v60 = vpop.f32.mrb[5].mxu0  ;;  %v1480_v19 = vpop.f32.mrb[5].mxu1 }
 0x36e   :  { %v1634_v32 = vadd.f32 %v1294_v60, %v999_v25  ;;  %v1658_v44 = vadd.f32 %v1480_v19, %v999_v25  ;;  %v1296_v14 = vpop.f32.mrb[6].mxu0  ;;  %v1482_v55 = vpop.f32.mrb[6].mxu1 }
 0x36f   :  { %1531 = vst [vmem:[#allocation10 + $0x20] sm:$0xff] %v1633_v47  ;;  %1556 = vst [vmem:[#allocation10 + $0xe0] sm:$0xff] %v1657_v39  ;;  %v1635_v38 = vadd.f32 %v1296_v14, %v1004_v20  ;;  %v1659_v46 = vadd.f32 %v1482_v55, %v1004_v20  ;;  %v1298_v45 = vpop.f32.mrb[7].mxu0  ;;  %v1484_v56 = vpop.f32.mrb[7].mxu1 }
 0x370   :  { %1532 = vst [vmem:[#allocation10 + $0x28] sm:$0xff] %v1634_v32  ;;  %1557 = vst [vmem:[#allocation10 + $0xe8] sm:$0xff] %v1658_v44  ;;  %v1636_v61 = vadd.f32 %v1298_v45, %v1004_v20  ;;  %v1660_v58 = vadd.f32 %v1484_v56, %v1004_v20  ;;  %v1039_v32 = vpop.permute.xlu1 %1038  ;;  %v1044_v44 = vpop.permute.xlu0 %1043 }
 0x371   :  { %1533 = vst [vmem:[#allocation10 + $0x30] sm:$0xff] %v1635_v38  ;;  %1558 = vst [vmem:[#allocation10 + $0xf0] sm:$0xff] %v1659_v46 }
 0x372   :  { %1534 = vst [vmem:[#allocation10 + $0x38] sm:$0xff] %v1636_v61  ;;  %1559 = vst [vmem:[#allocation10 + $0xf8] sm:$0xff] %v1660_v58 }
 0x374   :  { %v1302_v7 = vpop.f32.mrb[8].mxu0  ;;  %v1488_v12 = vpop.f32.mrb[8].mxu1 }
 0x375   :  { %v1637_v52 = vadd.f32 %v1302_v7, %v1009_v11  ;;  %v1661_v37 = vadd.f32 %v1488_v12, %v1009_v11  ;;  %v1304_v40 = vpop.f32.mrb[9].mxu0  ;;  %v1490_v50 = vpop.f32.mrb[9].mxu1 }
 0x376   :  { %v1638_v3 = vadd.f32 %v1304_v40, %v1009_v11  ;;  %v1662_v51 = vadd.f32 %v1490_v50, %v1009_v11  ;;  %v1306_v43 = vpop.f32.mrb[10].mxu0  ;;  %v1492_v54 = vpop.f32.mrb[10].mxu1 }
 0x377   :  { %1535 = vst [vmem:[#allocation10 + $0x40] sm:$0xff] %v1637_v52  ;;  %1560 = vst [vmem:[#allocation10 + $0x100] sm:$0xff] %v1661_v37  ;;  %v1639_v34 = vadd.f32 %v1306_v43, %v1014_v28  ;;  %v1663_v48 = vadd.f32 %v1492_v54, %v1014_v28  ;;  %v1308_v8 = vpop.f32.mrb[11].mxu0  ;;  %v1494_v13 = vpop.f32.mrb[11].mxu1 }
 0x378   :  { %1536 = vst [vmem:[#allocation10 + $0x48] sm:$0xff] %v1638_v3  ;;  %1561 = vst [vmem:[#allocation10 + $0x108] sm:$0xff] %v1662_v51  ;;  %v1640_v33 = vadd.f32 %v1308_v8, %v1014_v28  ;;  %v1664_v53 = vadd.f32 %v1494_v13, %v1014_v28 }
 0x379   :  { %1537 = vst [vmem:[#allocation10 + $0x50] sm:$0xff] %v1639_v34  ;;  %1562 = vst [vmem:[#allocation10 + $0x110] sm:$0xff] %v1663_v48 }
 0x37a   :  { %1538 = vst [vmem:[#allocation10 + $0x58] sm:$0xff] %v1640_v33  ;;  %1563 = vst [vmem:[#allocation10 + $0x118] sm:$0xff] %v1664_v53 }
 0x37c   :  { %v1312_v31 = vpop.f32.mrb[12].mxu0  ;;  %v1498_v35 = vpop.f32.mrb[12].mxu1 }
 0x37d   :  { %v1641_v29 = vadd.f32 %v1312_v31, %v1019_v0  ;;  %v1665_v36 = vadd.f32 %v1498_v35, %v1019_v0  ;;  %v1314_v4 = vpop.f32.mrb[13].mxu0  ;;  %v1500_v62 = vpop.f32.mrb[13].mxu1 }
 0x37e   :  { %v1642_v41 = vadd.f32 %v1314_v4, %v1019_v0  ;;  %v1666_v17 = vadd.f32 %v1500_v62, %v1019_v0  ;;  %v1316_v57 = vpop.f32.mrb[14].mxu0  ;;  %v1502_v26 = vpop.f32.mrb[14].mxu1 }
 0x37f   :  { %1539 = vst [vmem:[#allocation10 + $0x60] sm:$0xff] %v1641_v29  ;;  %1564 = vst [vmem:[#allocation10 + $0x120] sm:$0xff] %v1665_v36  ;;  %v1643_v49 = vadd.f32 %v1316_v57, %v1024_v21  ;;  %v1667_v30 = vadd.f32 %v1502_v26, %v1024_v21  ;;  %v1318_v2 = vpop.f32.mrb[15].mxu0  ;;  %v1504_v27 = vpop.f32.mrb[15].mxu1 }
 0x380   :  { %1540 = vst [vmem:[#allocation10 + $0x68] sm:$0xff] %v1642_v41  ;;  %1565 = vst [vmem:[#allocation10 + $0x128] sm:$0xff] %v1666_v17  ;;  %v1644_v59 = vadd.f32 %v1318_v2, %v1024_v21  ;;  %v1668_v5 = vadd.f32 %v1504_v27, %v1024_v21 }
 0x381   :  { %1541 = vst [vmem:[#allocation10 + $0x70] sm:$0xff] %v1643_v49  ;;  %1566 = vst [vmem:[#allocation10 + $0x130] sm:$0xff] %v1667_v30 }
 0x382   :  { %1542 = vst [vmem:[#allocation10 + $0x78] sm:$0xff] %v1644_v59  ;;  %1567 = vst [vmem:[#allocation10 + $0x138] sm:$0xff] %v1668_v5 }
 0x384   :  { %v1322_v18 = vpop.f32.mrb[16].mxu0  ;;  %v1508_v6 = vpop.f32.mrb[16].mxu1 }
 0x385   :  { %v1645_v22 = vadd.f32 %v1322_v18, %v1029_v10  ;;  %v1669_v23 = vadd.f32 %v1508_v6, %v1029_v10  ;;  %v1324_v9 = vpop.f32.mrb[17].mxu0  ;;  %v1510_v24 = vpop.f32.mrb[17].mxu1 }
 0x386   :  { %v1646_v16 = vadd.f32 %v1324_v9, %v1029_v10  ;;  %v1670_v1 = vadd.f32 %v1510_v24, %v1029_v10  ;;  %v1326_v25 = vpop.f32.mrb[18].mxu0  ;;  %v1512_v20 = vpop.f32.mrb[18].mxu1 }
 0x387   :  { %1543 = vst [vmem:[#allocation10 + $0x80] sm:$0xff] %v1645_v22  ;;  %1568 = vst [vmem:[#allocation10 + $0x140] sm:$0xff] %v1669_v23  ;;  %v1647_v42 = vadd.f32 %v1326_v25, %v1034_v63  ;;  %v1671_v15 = vadd.f32 %v1512_v20, %v1034_v63  ;;  %v1328_v47 = vpop.f32.mrb[19].mxu0  ;;  %v1514_v39 = vpop.f32.mrb[19].mxu1 }
 0x388   :  { %1544 = vst [vmem:[#allocation10 + $0x88] sm:$0xff] %v1646_v16  ;;  %1569 = vst [vmem:[#allocation10 + $0x148] sm:$0xff] %v1670_v1  ;;  %v1648_v60 = vadd.f32 %v1328_v47, %v1034_v63  ;;  %v1672_v19 = vadd.f32 %v1514_v39, %v1034_v63 }
 0x389   :  { %1545 = vst [vmem:[#allocation10 + $0x90] sm:$0xff] %v1647_v42  ;;  %1570 = vst [vmem:[#allocation10 + $0x150] sm:$0xff] %v1671_v15 }
 0x38a   :  { %1546 = vst [vmem:[#allocation10 + $0x98] sm:$0xff] %v1648_v60  ;;  %1571 = vst [vmem:[#allocation10 + $0x158] sm:$0xff] %v1672_v19 }
 0x38c   :  { %v1332_v14 = vpop.f32.mrb[20].mxu0  ;;  %v1518_v55 = vpop.f32.mrb[20].mxu1 }
 0x38d   :  { %v1649_v38 = vadd.f32 %v1332_v14, %v1039_v32  ;;  %v1673_v46 = vadd.f32 %v1518_v55, %v1039_v32  ;;  %v1334_v45 = vpop.f32.mrb[21].mxu0  ;;  %v1520_v56 = vpop.f32.mrb[21].mxu1 }
 0x38e   :  { %v1650_v61 = vadd.f32 %v1334_v45, %v1039_v32  ;;  %v1674_v58 = vadd.f32 %v1520_v56, %v1039_v32  ;;  %v1336_v11 = vpop.f32.mrb[22].mxu0  ;;  %v1522_v28 = vpop.f32.mrb[22].mxu1 }
 0x38f   :  { %1547 = vst [vmem:[#allocation10 + $0xa0] sm:$0xff] %v1649_v38  ;;  %1572 = vst [vmem:[#allocation10 + $0x160] sm:$0xff] %v1673_v46  ;;  %v1651_v7 = vadd.f32 %v1336_v11, %v1044_v44  ;;  %v1675_v12 = vadd.f32 %v1522_v28, %v1044_v44  ;;  %v1338_v52 = vpop.f32.mrb[23].mxu0  ;;  %v1524_v37 = vpop.f32.mrb[23].mxu1 }
 0x390   :  { %1548 = vst [vmem:[#allocation10 + $0xa8] sm:$0xff] %v1650_v61  ;;  %1573 = vst [vmem:[#allocation10 + $0x168] sm:$0xff] %v1674_v58  ;;  %v1652_v40 = vadd.f32 %v1338_v52, %v1044_v44  ;;  %v1676_v50 = vadd.f32 %v1524_v37, %v1044_v44 }
 0x391   :  { %1549 = vst [vmem:[#allocation10 + $0xb0] sm:$0xff] %v1651_v7  ;;  %1574 = vst [vmem:[#allocation10 + $0x170] sm:$0xff] %v1675_v12 }
 0x392   :  { %1550 = vst [vmem:[#allocation10 + $0xb8] sm:$0xff] %v1652_v40  ;;  %1575 = vst [vmem:[#allocation10 + $0x178] sm:$0xff] %v1676_v50 }
 0x393   :  { %1872 = shalt.err (!%p1869_p0)
}
 0x394   :  { %s1873_s7 = scalar_lea.hbm %s2899_s5, 6144 }
 0x395   :  { %p1874_p1 = scmp.ne.s32.totalorder %s2899_s5, %s1873_s7  ;;  %p1877_p2 = scmp.lt.u32.totalorder %s1873_s7, %s2899_s5 }
 0x397   :  { %p1879_p3 = pnand %p1877_p2, %p1874_p1 }
 0x399   :  { %1882 = shalt.err (!%p1879_p3)
}
 0x39a   :  { %1587 = dma.vmem_to_hbm [thread:$0]  %s1582_s26, 6144, %s2899_s5, [#allocation4], %s1892_s28, %s1892_s28, %s1893_s29  }
 0x39b   :  { %1889 = dma.done.wait [#allocation4], 6144  }
 0x39c   :  { %1890 = vsyncadd [#allocation4], 4294961152 }
 0x39d   :  { %1591 = vsyncpa [#allocation3], 1 }
 0x39e   :  { %1592 = vsyncpa [#allocation6], 1 }
 0x39f   :  { %1593 = vsyncpa [#allocation9], 1 }
 0x3a0   :  { %1594 = vsyncpa [#allocation4], 1 }

</bundles_post_ra>
